<compile_context>
chip_gen: v6e
topology: v6e:2x2x1
jax: 0.10.0
libtpu: 0.0.40
codegen_flags: <defaults>
</compile_context>

<pallas_src>
import functools

import jax
import jax.numpy as jnp
from jax import lax
from jax.experimental import pallas as pl
from jax.experimental.pallas import tpu as pltpu


def _round_up(v, mult):
    return ((v + mult - 1) // mult) * mult


def _convlr_kernel(x_ref, w_ref, b_ref, y_ref, *, n_chunks, unroll):
    # x_ref : (W, C, TM)   width columns; TM = tile of M = N*H (lanes)
    # w_ref : (C, C)       center conv tap (C_out, C_in), matmul dtype
    # b_ref : (C, 1)       conv bias, f32
    # y_ref : (W, C, TM)   output columns
    w_cols, c, tm = x_ref.shape
    tmc = tm // n_chunks

    w_mat = w_ref[...]                                            # (C_out, C_in)
    # Hoisted once: JAX does not CSE broadcast_in_dim inside the loops.
    bias = jnp.broadcast_to(b_ref[...].astype(jnp.float32), (c, tmc))

    def load(ref, i):
        if n_chunks == 1:
            return [ref[i].astype(jnp.float32)]
        return [ref[i, :, pl.ds(k * tmc, tmc)].astype(jnp.float32)
                for k in range(n_chunks)]

    def store(ref, i, chunks):
        if n_chunks == 1:
            ref[i] = chunks[0].astype(ref.dtype)
        else:
            for k in range(n_chunks):
                ref[i, :, pl.ds(k * tmc, tmc)] = chunks[k].astype(ref.dtype)

    def step(chunks):
        # ReLU(W @ col + b) == Conv2d(center tap) + ReLU on a width-1 column.
        # bf16 operands on the MXU with f32 accumulation; independent chunks
        # keep the MXU push->pop pipeline full despite the tiny per-step GEMM.
        # TODO(synk): evaluate weight-stationary pltpu.matmul_push_rhs only if
        # bundle dumps show the per-step RHS push dominating MXU time.
        zs = [jnp.dot(w_mat, ck.astype(w_mat.dtype),
                      preferred_element_type=jnp.float32) for ck in chunks]
        return [jnp.maximum(z + bias, 0.0) for z in zs]

    # ---- left -> right pass ----
    first = load(x_ref, 0)
    store(y_ref, 0, first)

    def lr_body(i, carry):
        cur = [s + xk for s, xk in zip(step(carry), load(x_ref, i))]
        store(y_ref, i, cur)
        return cur

    last = lax.fori_loop(1, w_cols, lr_body, first, unroll=unroll)

    # ---- right -> left pass ----
    def rl_body(j, carry):
        pos = w_cols - 1 - j
        cur = [s + yk for s, yk in zip(step(carry), load(y_ref, pos))]
        store(y_ref, pos, cur)
        return cur

    lax.fori_loop(1, w_cols, rl_body, last, unroll=unroll)


def _vmem_limit_bytes():
    """Per-TensorCore VMEM budget with headroom for Mosaic internal scratch."""
    reported = 0
    try:
        reported = int(getattr(pltpu.get_tpu_info(), "vmem_capacity_bytes", 0))
    except Exception:
        reported = 0
    if reported <= 0:
        reported = 64 << 20                       # conservative: v7x per-TC VMEM
    cap = min(reported, 128 << 20)
    if cap <= (64 << 20):                         # v7x-like per-TC capacity
        return max(32 << 20, min(int(cap * 0.75), 48 << 20))
    return max(32 << 20, min(int(cap * 0.75), 96 << 20))


def _choose_tile_m(w, c, m_pad, x_itemsize, vmem_limit, tile_cap=8192):
    """Largest lane-aligned M tile whose pipeline buffers fit the VMEM budget,
    additionally capped so the grid has >= 2 tiles (v7x megacore) when M allows."""
    per_tm = 4 * w * c * x_itemsize + 16 * c      # 2x(x)+2x(y) dbl buffers + f32 temps
    fixed = 2 * (c * c * 4 + c * 4)               # VMEM-resident weight + bias
    budget = int(vmem_limit * 0.7) - fixed        # headroom for internal scratch
    tm = max(128, (max(budget, 0) // max(per_tm, 1)) // 128 * 128)
    tm = min(tm, tile_cap, m_pad)
    if m_pad >= 256:
        # Guarantee >= 2 grid tiles so dimension_semantics=("parallel",) can
        # shard the M axis across v7x's two TensorCores.
        tm = min(tm, _round_up(m_pad // 2, 128))
    return max(128, (tm // 128) * 128)


def conv_lr(x_nchw, weight, bias, kernel_size=(1, 5), tile_m=None,
            matmul_dtype=jnp.bfloat16):
    """x_nchw: (N, C, H, W); weight: (C, C, kh, kw); bias: (C,)."""
    n, c, h, w = x_nchw.shape
    kh, kw = kernel_size
    assert kh == 1 and kw % 2 == 1, "width-1 conv input requires kh == 1, odd kw"
    p = (kw - 1) // 2

    # Only the center tap of the kernel overlaps the (width-1) input column.
    w_center = weight[:, :, 0, p].astype(matmul_dtype)            # (C_out, C_in)
    b2d = bias.reshape(c, 1).astype(jnp.float32)

    m = n * h
    # NCHW -> (W, C, N*H): recurrence axis leading, C on sublanes, M on lanes.
    x_cols = jnp.transpose(x_nchw, (3, 1, 0, 2)).reshape(w, c, m)

    vmem_limit = _vmem_limit_bytes()
    m_pad = _round_up(m, 128)
    if tile_m is None:
        tile_m = _choose_tile_m(w, c, m_pad, x_cols.dtype.itemsize, vmem_limit)
    tile_m = max(128, (min(int(tile_m), m_pad) // 128) * 128)

    # Pad M so every grid tile is full: unmasked lane-dense stores everywhere.
    m_pad = _round_up(m_pad, tile_m)
    if m_pad != m:
        x_cols = jnp.pad(x_cols, ((0, 0), (0, 0), (0, m_pad - m)))
    grid = (m_pad // tile_m,)

    # Independent M sub-chunks per step; tmc sized to the 256-wide MXU
    # (v6e/v7x) when tile_m allows it.  Chunk count / unroll bounded so the
    # live f32 carries + working set stay inside the 64-vreg file.
    if tile_m % 1024 == 0:
        n_chunks = 4
    elif tile_m % 512 == 0:
        n_chunks = 2
    else:
        n_chunks = 1
    steps = max(w - 1, 1)
    if n_chunks >= 4:
        unroll = min(2, steps)
    elif w <= 16:
        unroll = True
    else:
        unroll = min(4, steps)

    kernel = functools.partial(_convlr_kernel, n_chunks=n_chunks, unroll=unroll)
    itemsize = x_cols.dtype.itemsize

    y_cols = pl.pallas_call(
        kernel,
        out_shape=jax.ShapeDtypeStruct((w, c, m_pad), x_cols.dtype),
        grid=grid,
        in_specs=[
            # TODO(synk): on v5e add pipeline_mode=pl.Buffered(3) here if xprof
            # shows exposed DMA (slowest HBM generation).
            pl.BlockSpec((w, c, tile_m), lambda i: (0, 0, i)),    # x tile
            pl.BlockSpec((c, c), lambda i: (0, 0)),               # weight (resident)
            pl.BlockSpec((c, 1), lambda i: (0, 0)),               # bias (resident)
        ],
        out_specs=pl.BlockSpec((w, c, tile_m), lambda i: (0, 0, i)),
        compiler_params=pltpu.CompilerParams(
            dimension_semantics=("parallel",),
            vmem_limit_bytes=int(vmem_limit),
        ),
        cost_estimate=pl.CostEstimate(
            flops=4 * max(w - 1, 0) * c * c * m_pad,
            transcendentals=0,
            bytes_accessed=2 * w * c * m_pad * itemsize,
        ),
    )(x_cols, w_center, b2d)

    # (W, C, M) -> NCHW (drop the M padding first).
    y_cols = y_cols[:, :, :m]
    return jnp.transpose(y_cols.reshape(w, c, n, h), (2, 1, 3, 0))


def conv_lr_reference(x_nchw, weight, bias, kernel_size=(1, 5),
                      matmul_dtype=jnp.float32):
    """Pure-JAX replica of the PyTorch forward (for validation)."""
    n, c, h, w = x_nchw.shape
    p = (kernel_size[1] - 1) // 2
    wm = weight[:, :, 0, p].astype(matmul_dtype)                  # (C_out, C_in)
    b = bias.reshape(1, c, 1).astype(jnp.float32)

    def step(col):                                                # col: (N, C, H)
        z = jnp.einsum("dc,nch->ndh", wm, col.astype(matmul_dtype),
                       preferred_element_type=jnp.float32) + b
        return jnp.maximum(z, 0.0)

    cols = [x_nchw[:, :, :, i].astype(jnp.float32) for i in range(w)]
    stack = [cols[0]]
    for i in range(1, w):
        stack.append(step(stack[i - 1]) + cols[i])
    for i in range(w):
        pos = w - i - 1
        if pos == w - 1:
            continue
        stack[pos] = step(stack[pos + 1]) + stack[pos]
    return jnp.stack(stack, axis=3).astype(x_nchw.dtype)


if __name__ == "__main__":
    key = jax.random.PRNGKey(0)
    kx, kw_, kb = jax.random.split(key, 3)

    N, C, H, W = 2, 32, 256, 8          # M = N*H = 512 -> >= 2 grid tiles
    KH, KW = 1, 5

    x = jax.random.normal(kx, (N, C, H, W), dtype=jnp.float32)
    weight = jax.random.normal(kw_, (C, C, KH, KW), dtype=jnp.float32) * 0.05
    bias = jax.random.normal(kb, (C,), dtype=jnp.float32) * 0.05

    out = conv_lr(x, weight, bias, kernel_size=(KH, KW))
    out = jax.block_until_ready(out)
    assert out.shape == (N, C, H, W)

    # Tight check vs a reference that uses the same bf16 matmul operands.
    ref_bf16 = conv_lr_reference(x, weight, bias, (KH, KW),
                                 matmul_dtype=jnp.bfloat16)
    assert jnp.allclose(out, ref_bf16, atol=2e-3, rtol=2e-3), \
        "mismatch vs bf16-operand reference"

    # Loose check vs the full-f32 PyTorch-equivalent reference (bf16 matmul
    # operands introduce ~1e-3-level rounding over the recurrence).
    ref_f32 = conv_lr_reference(x, weight, bias, (KH, KW),
                                matmul_dtype=jnp.float32)
    assert jnp.allclose(out, ref_f32, atol=2e-2, rtol=2e-2), \
        "mismatch vs f32 reference"

    print("KERNEL_OK")
</pallas_src>

<mosaic_0001>
module attributes {stable_mosaic.version = 11 : i64} {
  func.func @_convlr_kernel(%arg0: i32, %arg1: memref<8x32x256xf32, #tpu.memory_space<vmem>>, %arg2: memref<32x32xbf16, #tpu.memory_space<vmem>>, %arg3: memref<32x1xf32, #tpu.memory_space<vmem>>, %arg4: memref<8x32x256xf32, #tpu.memory_space<vmem>>) attributes {dimension_semantics = [#tpu.dimension_semantics<parallel>], iteration_bounds = array<i64: 2>, scalar_prefetch = 0 : i64, scratch_operands = 0 : i64, tpu.core_type = #tpu.core_type<tc>, window_params = [{transform_indices = @transform_0, window_bounds = array<i64: 8, 32, 256>}, {pipeline_mode = #tpu.pipeline_mode<synchronous>, transform_indices = @transform_1, window_bounds = array<i64: 32, 32>}, {pipeline_mode = #tpu.pipeline_mode<synchronous>, transform_indices = @transform_2, window_bounds = array<i64: 32, 1>}, {transform_indices = @transform_3, window_bounds = array<i64: 8, 32, 256>}]} {
    %c0 = arith.constant 0 : index
    %c0_0 = arith.constant 0 : index
    %0 = vector.load %arg2[%c0, %c0_0] : memref<32x32xbf16, #tpu.memory_space<vmem>>, vector<32x32xbf16>
    %c0_1 = arith.constant 0 : index
    %c0_2 = arith.constant 0 : index
    %1 = vector.load %arg3[%c0_1, %c0_2] : memref<32x1xf32, #tpu.memory_space<vmem>>, vector<32x1xf32>
    %2 = vector.shape_cast %1 : vector<32x1xf32> to vector<32x1xf32>
    %3 = vector.broadcast %2 : vector<32x1xf32> to vector<32x256xf32>
    %c0_3 = arith.constant 0 : index
    %c0_4 = arith.constant 0 : index
    %c0_5 = arith.constant 0 : index
    %4 = vector.load %arg1[%c0_3, %c0_4, %c0_5] : memref<8x32x256xf32, #tpu.memory_space<vmem>>, vector<1x32x256xf32>
    %5 = vector.shape_cast %4 : vector<1x32x256xf32> to vector<32x256xf32>
    %c0_6 = arith.constant 0 : index
    %c0_7 = arith.constant 0 : index
    %c0_8 = arith.constant 0 : index
    %6 = vector.load %arg4[%c0_6, %c0_7, %c0_8] : memref<8x32x256xf32, #tpu.memory_space<vmem>>, vector<1x32x256xf32>
    %7 = vector.shape_cast %6 : vector<1x32x256xf32> to vector<32x256xf32>
    %8 = vector.shape_cast %5 : vector<32x256xf32> to vector<1x32x256xf32>
    tpu.vector_store %arg4[%c0_6, %c0_7, %c0_8], %8 {strides = array<i32>} : memref<8x32x256xf32, #tpu.memory_space<vmem>>, vector<1x32x256xf32>,
    %c1_i32 = arith.constant 1 : i32
    %9 = arith.truncf %5 : vector<32x256xf32> to vector<32x256xbf16>
    %cst = arith.constant dense<0.000000e+00> : vector<32x256xf32>
    %10 = tpu.matmul %0, %9, %cst {dimension_numbers = #tpu.dot_dimension_numbers<[1], [0], [0], [1], [0, 0, 1, 1], [], []>} : vector<32x32xbf16>, vector<32x256xbf16>, vector<32x256xf32> -> vector<32x256xf32>
    %11 = arith.addf %10, %3 : vector<32x256xf32>
    %cst_9 = arith.constant 0.000000e+00 : f32
    %12 = vector.broadcast %cst_9 : f32 to vector<32x256xf32>
    %13 = arith.maximumf %11, %12 : vector<32x256xf32>
    %14 = arith.index_cast %c1_i32 : i32 to index
    %c0_10 = arith.constant 0 : index
    %c0_11 = arith.constant 0 : index
    %15 = vector.load %arg1[%14, %c0_10, %c0_11] : memref<8x32x256xf32, #tpu.memory_space<vmem>>, vector<1x32x256xf32>
    %16 = vector.shape_cast %15 : vector<1x32x256xf32> to vector<32x256xf32>
    %17 = arith.addf %13, %16 : vector<32x256xf32>
    %18 = arith.index_cast %c1_i32 : i32 to index
    %c0_12 = arith.constant 0 : index
    %c0_13 = arith.constant 0 : index
    %19 = vector.load %arg4[%18, %c0_12, %c0_13] : memref<8x32x256xf32, #tpu.memory_space<vmem>>, vector<1x32x256xf32>
    %20 = vector.shape_cast %19 : vector<1x32x256xf32> to vector<32x256xf32>
    %21 = vector.shape_cast %17 : vector<32x256xf32> to vector<1x32x256xf32>
    tpu.vector_store %arg4[%18, %c0_12, %c0_13], %21 {strides = array<i32>} : memref<8x32x256xf32, #tpu.memory_space<vmem>>, vector<1x32x256xf32>,
    %c2_i32 = arith.constant 2 : i32
    %22 = arith.truncf %17 : vector<32x256xf32> to vector<32x256xbf16>
    %cst_14 = arith.constant dense<0.000000e+00> : vector<32x256xf32>
    %23 = tpu.matmul %0, %22, %cst_14 {dimension_numbers = #tpu.dot_dimension_numbers<[1], [0], [0], [1], [0, 0, 1, 1], [], []>} : vector<32x32xbf16>, vector<32x256xbf16>, vector<32x256xf32> -> vector<32x256xf32>
    %24 = arith.addf %23, %3 : vector<32x256xf32>
    %cst_15 = arith.constant 0.000000e+00 : f32
    %25 = vector.broadcast %cst_15 : f32 to vector<32x256xf32>
    %26 = arith.maximumf %24, %25 : vector<32x256xf32>
    %27 = arith.index_cast %c2_i32 : i32 to index
    %c0_16 = arith.constant 0 : index
    %c0_17 = arith.constant 0 : index
    %28 = vector.load %arg1[%27, %c0_16, %c0_17] : memref<8x32x256xf32, #tpu.memory_space<vmem>>, vector<1x32x256xf32>
    %29 = vector.shape_cast %28 : vector<1x32x256xf32> to vector<32x256xf32>
    %30 = arith.addf %26, %29 : vector<32x256xf32>
    %31 = arith.index_cast %c2_i32 : i32 to index
    %c0_18 = arith.constant 0 : index
    %c0_19 = arith.constant 0 : index
    %32 = vector.load %arg4[%31, %c0_18, %c0_19] : memref<8x32x256xf32, #tpu.memory_space<vmem>>, vector<1x32x256xf32>
    %33 = vector.shape_cast %32 : vector<1x32x256xf32> to vector<32x256xf32>
    %34 = vector.shape_cast %30 : vector<32x256xf32> to vector<1x32x256xf32>
    tpu.vector_store %arg4[%31, %c0_18, %c0_19], %34 {strides = array<i32>} : memref<8x32x256xf32, #tpu.memory_space<vmem>>, vector<1x32x256xf32>,
    %c3_i32 = arith.constant 3 : i32
    %35 = arith.truncf %30 : vector<32x256xf32> to vector<32x256xbf16>
    %cst_20 = arith.constant dense<0.000000e+00> : vector<32x256xf32>
    %36 = tpu.matmul %0, %35, %cst_20 {dimension_numbers = #tpu.dot_dimension_numbers<[1], [0], [0], [1], [0, 0, 1, 1], [], []>} : vector<32x32xbf16>, vector<32x256xbf16>, vector<32x256xf32> -> vector<32x256xf32>
    %37 = arith.addf %36, %3 : vector<32x256xf32>
    %cst_21 = arith.constant 0.000000e+00 : f32
    %38 = vector.broadcast %cst_21 : f32 to vector<32x256xf32>
    %39 = arith.maximumf %37, %38 : vector<32x256xf32>
    %40 = arith.index_cast %c3_i32 : i32 to index
    %c0_22 = arith.constant 0 : index
    %c0_23 = arith.constant 0 : index
    %41 = vector.load %arg1[%40, %c0_22, %c0_23] : memref<8x32x256xf32, #tpu.memory_space<vmem>>, vector<1x32x256xf32>
    %42 = vector.shape_cast %41 : vector<1x32x256xf32> to vector<32x256xf32>
    %43 = arith.addf %39, %42 : vector<32x256xf32>
    %44 = arith.index_cast %c3_i32 : i32 to index
    %c0_24 = arith.constant 0 : index
    %c0_25 = arith.constant 0 : index
    %45 = vector.load %arg4[%44, %c0_24, %c0_25] : memref<8x32x256xf32, #tpu.memory_space<vmem>>, vector<1x32x256xf32>
    %46 = vector.shape_cast %45 : vector<1x32x256xf32> to vector<32x256xf32>
    %47 = vector.shape_cast %43 : vector<32x256xf32> to vector<1x32x256xf32>
    tpu.vector_store %arg4[%44, %c0_24, %c0_25], %47 {strides = array<i32>} : memref<8x32x256xf32, #tpu.memory_space<vmem>>, vector<1x32x256xf32>,
    %c4_i32 = arith.constant 4 : i32
    %48 = arith.truncf %43 : vector<32x256xf32> to vector<32x256xbf16>
    %cst_26 = arith.constant dense<0.000000e+00> : vector<32x256xf32>
    %49 = tpu.matmul %0, %48, %cst_26 {dimension_numbers = #tpu.dot_dimension_numbers<[1], [0], [0], [1], [0, 0, 1, 1], [], []>} : vector<32x32xbf16>, vector<32x256xbf16>, vector<32x256xf32> -> vector<32x256xf32>
    %50 = arith.addf %49, %3 : vector<32x256xf32>
    %cst_27 = arith.constant 0.000000e+00 : f32
    %51 = vector.broadcast %cst_27 : f32 to vector<32x256xf32>
    %52 = arith.maximumf %50, %51 : vector<32x256xf32>
    %53 = arith.index_cast %c4_i32 : i32 to index
    %c0_28 = arith.constant 0 : index
    %c0_29 = arith.constant 0 : index
    %54 = vector.load %arg1[%53, %c0_28, %c0_29] : memref<8x32x256xf32, #tpu.memory_space<vmem>>, vector<1x32x256xf32>
    %55 = vector.shape_cast %54 : vector<1x32x256xf32> to vector<32x256xf32>
    %56 = arith.addf %52, %55 : vector<32x256xf32>
    %57 = arith.index_cast %c4_i32 : i32 to index
    %c0_30 = arith.constant 0 : index
    %c0_31 = arith.constant 0 : index
    %58 = vector.load %arg4[%57, %c0_30, %c0_31] : memref<8x32x256xf32, #tpu.memory_space<vmem>>, vector<1x32x256xf32>
    %59 = vector.shape_cast %58 : vector<1x32x256xf32> to vector<32x256xf32>
    %60 = vector.shape_cast %56 : vector<32x256xf32> to vector<1x32x256xf32>
    tpu.vector_store %arg4[%57, %c0_30, %c0_31], %60 {strides = array<i32>} : memref<8x32x256xf32, #tpu.memory_space<vmem>>, vector<1x32x256xf32>,
    %c5_i32 = arith.constant 5 : i32
    %61 = arith.truncf %56 : vector<32x256xf32> to vector<32x256xbf16>
    %cst_32 = arith.constant dense<0.000000e+00> : vector<32x256xf32>
    %62 = tpu.matmul %0, %61, %cst_32 {dimension_numbers = #tpu.dot_dimension_numbers<[1], [0], [0], [1], [0, 0, 1, 1], [], []>} : vector<32x32xbf16>, vector<32x256xbf16>, vector<32x256xf32> -> vector<32x256xf32>
    %63 = arith.addf %62, %3 : vector<32x256xf32>
    %cst_33 = arith.constant 0.000000e+00 : f32
    %64 = vector.broadcast %cst_33 : f32 to vector<32x256xf32>
    %65 = arith.maximumf %63, %64 : vector<32x256xf32>
    %66 = arith.index_cast %c5_i32 : i32 to index
    %c0_34 = arith.constant 0 : index
    %c0_35 = arith.constant 0 : index
    %67 = vector.load %arg1[%66, %c0_34, %c0_35] : memref<8x32x256xf32, #tpu.memory_space<vmem>>, vector<1x32x256xf32>
    %68 = vector.shape_cast %67 : vector<1x32x256xf32> to vector<32x256xf32>
    %69 = arith.addf %65, %68 : vector<32x256xf32>
    %70 = arith.index_cast %c5_i32 : i32 to index
    %c0_36 = arith.constant 0 : index
    %c0_37 = arith.constant 0 : index
    %71 = vector.load %arg4[%70, %c0_36, %c0_37] : memref<8x32x256xf32, #tpu.memory_space<vmem>>, vector<1x32x256xf32>
    %72 = vector.shape_cast %71 : vector<1x32x256xf32> to vector<32x256xf32>
    %73 = vector.shape_cast %69 : vector<32x256xf32> to vector<1x32x256xf32>
    tpu.vector_store %arg4[%70, %c0_36, %c0_37], %73 {strides = array<i32>} : memref<8x32x256xf32, #tpu.memory_space<vmem>>, vector<1x32x256xf32>,
    %c6_i32 = arith.constant 6 : i32
    %74 = arith.truncf %69 : vector<32x256xf32> to vector<32x256xbf16>
    %cst_38 = arith.constant dense<0.000000e+00> : vector<32x256xf32>
    %75 = tpu.matmul %0, %74, %cst_38 {dimension_numbers = #tpu.dot_dimension_numbers<[1], [0], [0], [1], [0, 0, 1, 1], [], []>} : vector<32x32xbf16>, vector<32x256xbf16>, vector<32x256xf32> -> vector<32x256xf32>
    %76 = arith.addf %75, %3 : vector<32x256xf32>
    %cst_39 = arith.constant 0.000000e+00 : f32
    %77 = vector.broadcast %cst_39 : f32 to vector<32x256xf32>
    %78 = arith.maximumf %76, %77 : vector<32x256xf32>
    %79 = arith.index_cast %c6_i32 : i32 to index
    %c0_40 = arith.constant 0 : index
    %c0_41 = arith.constant 0 : index
    %80 = vector.load %arg1[%79, %c0_40, %c0_41] : memref<8x32x256xf32, #tpu.memory_space<vmem>>, vector<1x32x256xf32>
    %81 = vector.shape_cast %80 : vector<1x32x256xf32> to vector<32x256xf32>
    %82 = arith.addf %78, %81 : vector<32x256xf32>
    %83 = arith.index_cast %c6_i32 : i32 to index
    %c0_42 = arith.constant 0 : index
    %c0_43 = arith.constant 0 : index
    %84 = vector.load %arg4[%83, %c0_42, %c0_43] : memref<8x32x256xf32, #tpu.memory_space<vmem>>, vector<1x32x256xf32>
    %85 = vector.shape_cast %84 : vector<1x32x256xf32> to vector<32x256xf32>
    %86 = vector.shape_cast %82 : vector<32x256xf32> to vector<1x32x256xf32>
    tpu.vector_store %arg4[%83, %c0_42, %c0_43], %86 {strides = array<i32>} : memref<8x32x256xf32, #tpu.memory_space<vmem>>, vector<1x32x256xf32>,
    %c7_i32 = arith.constant 7 : i32
    %87 = arith.truncf %82 : vector<32x256xf32> to vector<32x256xbf16>
    %cst_44 = arith.constant dense<0.000000e+00> : vector<32x256xf32>
    %88 = tpu.matmul %0, %87, %cst_44 {dimension_numbers = #tpu.dot_dimension_numbers<[1], [0], [0], [1], [0, 0, 1, 1], [], []>} : vector<32x32xbf16>, vector<32x256xbf16>, vector<32x256xf32> -> vector<32x256xf32>
    %89 = arith.addf %88, %3 : vector<32x256xf32>
    %cst_45 = arith.constant 0.000000e+00 : f32
    %90 = vector.broadcast %cst_45 : f32 to vector<32x256xf32>
    %91 = arith.maximumf %89, %90 : vector<32x256xf32>
    %92 = arith.index_cast %c7_i32 : i32 to index
    %c0_46 = arith.constant 0 : index
    %c0_47 = arith.constant 0 : index
    %93 = vector.load %arg1[%92, %c0_46, %c0_47] : memref<8x32x256xf32, #tpu.memory_space<vmem>>, vector<1x32x256xf32>
    %94 = vector.shape_cast %93 : vector<1x32x256xf32> to vector<32x256xf32>
    %95 = arith.addf %91, %94 : vector<32x256xf32>
    %96 = arith.index_cast %c7_i32 : i32 to index
    %c0_48 = arith.constant 0 : index
    %c0_49 = arith.constant 0 : index
    %97 = vector.load %arg4[%96, %c0_48, %c0_49] : memref<8x32x256xf32, #tpu.memory_space<vmem>>, vector<1x32x256xf32>
    %98 = vector.shape_cast %97 : vector<1x32x256xf32> to vector<32x256xf32>
    %99 = vector.shape_cast %95 : vector<32x256xf32> to vector<1x32x256xf32>
    tpu.vector_store %arg4[%96, %c0_48, %c0_49], %99 {strides = array<i32>} : memref<8x32x256xf32, #tpu.memory_space<vmem>>, vector<1x32x256xf32>,
    %c7_i32_50 = arith.constant 7 : i32
    %c1_i32_51 = arith.constant 1 : i32
    %c7_i32_52 = arith.constant 7 : i32
    %100 = arith.subi %c7_i32_52, %c1_i32_51 : i32
    %101 = arith.truncf %95 : vector<32x256xf32> to vector<32x256xbf16>
    %cst_53 = arith.constant dense<0.000000e+00> : vector<32x256xf32>
    %102 = tpu.matmul %0, %101, %cst_53 {dimension_numbers = #tpu.dot_dimension_numbers<[1], [0], [0], [1], [0, 0, 1, 1], [], []>} : vector<32x32xbf16>, vector<32x256xbf16>, vector<32x256xf32> -> vector<32x256xf32>
    %103 = arith.addf %102, %3 : vector<32x256xf32>
    %cst_54 = arith.constant 0.000000e+00 : f32
    %104 = vector.broadcast %cst_54 : f32 to vector<32x256xf32>
    %105 = arith.maximumf %103, %104 : vector<32x256xf32>
    %106 = arith.index_cast %100 : i32 to index
    %c0_55 = arith.constant 0 : index
    %c0_56 = arith.constant 0 : index
    %107 = vector.load %arg4[%106, %c0_55, %c0_56] : memref<8x32x256xf32, #tpu.memory_space<vmem>>, vector<1x32x256xf32>
    %108 = vector.shape_cast %107 : vector<1x32x256xf32> to vector<32x256xf32>
    %109 = arith.addf %105, %108 : vector<32x256xf32>
    %110 = arith.index_cast %100 : i32 to index
    %c0_57 = arith.constant 0 : index
    %c0_58 = arith.constant 0 : index
    %111 = vector.load %arg4[%110, %c0_57, %c0_58] : memref<8x32x256xf32, #tpu.memory_space<vmem>>, vector<1x32x256xf32>
    %112 = vector.shape_cast %111 : vector<1x32x256xf32> to vector<32x256xf32>
    %113 = vector.shape_cast %109 : vector<32x256xf32> to vector<1x32x256xf32>
    tpu.vector_store %arg4[%110, %c0_57, %c0_58], %113 {strides = array<i32>} : memref<8x32x256xf32, #tpu.memory_space<vmem>>, vector<1x32x256xf32>,
    %c2_i32_59 = arith.constant 2 : i32
    %c7_i32_60 = arith.constant 7 : i32
    %114 = arith.subi %c7_i32_60, %c2_i32_59 : i32
    %115 = arith.truncf %109 : vector<32x256xf32> to vector<32x256xbf16>
    %cst_61 = arith.constant dense<0.000000e+00> : vector<32x256xf32>
    %116 = tpu.matmul %0, %115, %cst_61 {dimension_numbers = #tpu.dot_dimension_numbers<[1], [0], [0], [1], [0, 0, 1, 1], [], []>} : vector<32x32xbf16>, vector<32x256xbf16>, vector<32x256xf32> -> vector<32x256xf32>
    %117 = arith.addf %116, %3 : vector<32x256xf32>
    %cst_62 = arith.constant 0.000000e+00 : f32
    %118 = vector.broadcast %cst_62 : f32 to vector<32x256xf32>
    %119 = arith.maximumf %117, %118 : vector<32x256xf32>
    %120 = arith.index_cast %114 : i32 to index
    %c0_63 = arith.constant 0 : index
    %c0_64 = arith.constant 0 : index
    %121 = vector.load %arg4[%120, %c0_63, %c0_64] : memref<8x32x256xf32, #tpu.memory_space<vmem>>, vector<1x32x256xf32>
    %122 = vector.shape_cast %121 : vector<1x32x256xf32> to vector<32x256xf32>
    %123 = arith.addf %119, %122 : vector<32x256xf32>
    %124 = arith.index_cast %114 : i32 to index
    %c0_65 = arith.constant 0 : index
    %c0_66 = arith.constant 0 : index
    %125 = vector.load %arg4[%124, %c0_65, %c0_66] : memref<8x32x256xf32, #tpu.memory_space<vmem>>, vector<1x32x256xf32>
    %126 = vector.shape_cast %125 : vector<1x32x256xf32> to vector<32x256xf32>
    %127 = vector.shape_cast %123 : vector<32x256xf32> to vector<1x32x256xf32>
    tpu.vector_store %arg4[%124, %c0_65, %c0_66], %127 {strides = array<i32>} : memref<8x32x256xf32, #tpu.memory_space<vmem>>, vector<1x32x256xf32>,
    %c3_i32_67 = arith.constant 3 : i32
    %c7_i32_68 = arith.constant 7 : i32
    %128 = arith.subi %c7_i32_68, %c3_i32_67 : i32
    %129 = arith.truncf %123 : vector<32x256xf32> to vector<32x256xbf16>
    %cst_69 = arith.constant dense<0.000000e+00> : vector<32x256xf32>
    %130 = tpu.matmul %0, %129, %cst_69 {dimension_numbers = #tpu.dot_dimension_numbers<[1], [0], [0], [1], [0, 0, 1, 1], [], []>} : vector<32x32xbf16>, vector<32x256xbf16>, vector<32x256xf32> -> vector<32x256xf32>
    %131 = arith.addf %130, %3 : vector<32x256xf32>
    %cst_70 = arith.constant 0.000000e+00 : f32
    %132 = vector.broadcast %cst_70 : f32 to vector<32x256xf32>
    %133 = arith.maximumf %131, %132 : vector<32x256xf32>
    %134 = arith.index_cast %128 : i32 to index
    %c0_71 = arith.constant 0 : index
    %c0_72 = arith.constant 0 : index
    %135 = vector.load %arg4[%134, %c0_71, %c0_72] : memref<8x32x256xf32, #tpu.memory_space<vmem>>, vector<1x32x256xf32>
    %136 = vector.shape_cast %135 : vector<1x32x256xf32> to vector<32x256xf32>
    %137 = arith.addf %133, %136 : vector<32x256xf32>
    %138 = arith.index_cast %128 : i32 to index
    %c0_73 = arith.constant 0 : index
    %c0_74 = arith.constant 0 : index
    %139 = vector.load %arg4[%138, %c0_73, %c0_74] : memref<8x32x256xf32, #tpu.memory_space<vmem>>, vector<1x32x256xf32>
    %140 = vector.shape_cast %139 : vector<1x32x256xf32> to vector<32x256xf32>
    %141 = vector.shape_cast %137 : vector<32x256xf32> to vector<1x32x256xf32>
    tpu.vector_store %arg4[%138, %c0_73, %c0_74], %141 {strides = array<i32>} : memref<8x32x256xf32, #tpu.memory_space<vmem>>, vector<1x32x256xf32>,
    %c4_i32_75 = arith.constant 4 : i32
    %c7_i32_76 = arith.constant 7 : i32
    %142 = arith.subi %c7_i32_76, %c4_i32_75 : i32
    %143 = arith.truncf %137 : vector<32x256xf32> to vector<32x256xbf16>
    %cst_77 = arith.constant dense<0.000000e+00> : vector<32x256xf32>
    %144 = tpu.matmul %0, %143, %cst_77 {dimension_numbers = #tpu.dot_dimension_numbers<[1], [0], [0], [1], [0, 0, 1, 1], [], []>} : vector<32x32xbf16>, vector<32x256xbf16>, vector<32x256xf32> -> vector<32x256xf32>
    %145 = arith.addf %144, %3 : vector<32x256xf32>
    %cst_78 = arith.constant 0.000000e+00 : f32
    %146 = vector.broadcast %cst_78 : f32 to vector<32x256xf32>
    %147 = arith.maximumf %145, %146 : vector<32x256xf32>
    %148 = arith.index_cast %142 : i32 to index
    %c0_79 = arith.constant 0 : index
    %c0_80 = arith.constant 0 : index
    %149 = vector.load %arg4[%148, %c0_79, %c0_80] : memref<8x32x256xf32, #tpu.memory_space<vmem>>, vector<1x32x256xf32>
    %150 = vector.shape_cast %149 : vector<1x32x256xf32> to vector<32x256xf32>
    %151 = arith.addf %147, %150 : vector<32x256xf32>
    %152 = arith.index_cast %142 : i32 to index
    %c0_81 = arith.constant 0 : index
    %c0_82 = arith.constant 0 : index
    %153 = vector.load %arg4[%152, %c0_81, %c0_82] : memref<8x32x256xf32, #tpu.memory_space<vmem>>, vector<1x32x256xf32>
    %154 = vector.shape_cast %153 : vector<1x32x256xf32> to vector<32x256xf32>
    %155 = vector.shape_cast %151 : vector<32x256xf32> to vector<1x32x256xf32>
    tpu.vector_store %arg4[%152, %c0_81, %c0_82], %155 {strides = array<i32>} : memref<8x32x256xf32, #tpu.memory_space<vmem>>, vector<1x32x256xf32>,
    %c5_i32_83 = arith.constant 5 : i32
    %c7_i32_84 = arith.constant 7 : i32
    %156 = arith.subi %c7_i32_84, %c5_i32_83 : i32
    %157 = arith.truncf %151 : vector<32x256xf32> to vector<32x256xbf16>
    %cst_85 = arith.constant dense<0.000000e+00> : vector<32x256xf32>
    %158 = tpu.matmul %0, %157, %cst_85 {dimension_numbers = #tpu.dot_dimension_numbers<[1], [0], [0], [1], [0, 0, 1, 1], [], []>} : vector<32x32xbf16>, vector<32x256xbf16>, vector<32x256xf32> -> vector<32x256xf32>
    %159 = arith.addf %158, %3 : vector<32x256xf32>
    %cst_86 = arith.constant 0.000000e+00 : f32
    %160 = vector.broadcast %cst_86 : f32 to vector<32x256xf32>
    %161 = arith.maximumf %159, %160 : vector<32x256xf32>
    %162 = arith.index_cast %156 : i32 to index
    %c0_87 = arith.constant 0 : index
    %c0_88 = arith.constant 0 : index
    %163 = vector.load %arg4[%162, %c0_87, %c0_88] : memref<8x32x256xf32, #tpu.memory_space<vmem>>, vector<1x32x256xf32>
    %164 = vector.shape_cast %163 : vector<1x32x256xf32> to vector<32x256xf32>
    %165 = arith.addf %161, %164 : vector<32x256xf32>
    %166 = arith.index_cast %156 : i32 to index
    %c0_89 = arith.constant 0 : index
    %c0_90 = arith.constant 0 : index
    %167 = vector.load %arg4[%166, %c0_89, %c0_90] : memref<8x32x256xf32, #tpu.memory_space<vmem>>, vector<1x32x256xf32>
    %168 = vector.shape_cast %167 : vector<1x32x256xf32> to vector<32x256xf32>
    %169 = vector.shape_cast %165 : vector<32x256xf32> to vector<1x32x256xf32>
    tpu.vector_store %arg4[%166, %c0_89, %c0_90], %169 {strides = array<i32>} : memref<8x32x256xf32, #tpu.memory_space<vmem>>, vector<1x32x256xf32>,
    %c6_i32_91 = arith.constant 6 : i32
    %c7_i32_92 = arith.constant 7 : i32
    %170 = arith.subi %c7_i32_92, %c6_i32_91 : i32
    %171 = arith.truncf %165 : vector<32x256xf32> to vector<32x256xbf16>
    %cst_93 = arith.constant dense<0.000000e+00> : vector<32x256xf32>
    %172 = tpu.matmul %0, %171, %cst_93 {dimension_numbers = #tpu.dot_dimension_numbers<[1], [0], [0], [1], [0, 0, 1, 1], [], []>} : vector<32x32xbf16>, vector<32x256xbf16>, vector<32x256xf32> -> vector<32x256xf32>
    %173 = arith.addf %172, %3 : vector<32x256xf32>
    %cst_94 = arith.constant 0.000000e+00 : f32
    %174 = vector.broadcast %cst_94 : f32 to vector<32x256xf32>
    %175 = arith.maximumf %173, %174 : vector<32x256xf32>
    %176 = arith.index_cast %170 : i32 to index
    %c0_95 = arith.constant 0 : index
    %c0_96 = arith.constant 0 : index
    %177 = vector.load %arg4[%176, %c0_95, %c0_96] : memref<8x32x256xf32, #tpu.memory_space<vmem>>, vector<1x32x256xf32>
    %178 = vector.shape_cast %177 : vector<1x32x256xf32> to vector<32x256xf32>
    %179 = arith.addf %175, %178 : vector<32x256xf32>
    %180 = arith.index_cast %170 : i32 to index
    %c0_97 = arith.constant 0 : index
    %c0_98 = arith.constant 0 : index
    %181 = vector.load %arg4[%180, %c0_97, %c0_98] : memref<8x32x256xf32, #tpu.memory_space<vmem>>, vector<1x32x256xf32>
    %182 = vector.shape_cast %181 : vector<1x32x256xf32> to vector<32x256xf32>
    %183 = vector.shape_cast %179 : vector<32x256xf32> to vector<1x32x256xf32>
    tpu.vector_store %arg4[%180, %c0_97, %c0_98], %183 {strides = array<i32>} : memref<8x32x256xf32, #tpu.memory_space<vmem>>, vector<1x32x256xf32>,
    %c7_i32_99 = arith.constant 7 : i32
    %c7_i32_100 = arith.constant 7 : i32
    %184 = arith.subi %c7_i32_100, %c7_i32_99 : i32
    %185 = arith.truncf %179 : vector<32x256xf32> to vector<32x256xbf16>
    %cst_101 = arith.constant dense<0.000000e+00> : vector<32x256xf32>
    %186 = tpu.matmul %0, %185, %cst_101 {dimension_numbers = #tpu.dot_dimension_numbers<[1], [0], [0], [1], [0, 0, 1, 1], [], []>} : vector<32x32xbf16>, vector<32x256xbf16>, vector<32x256xf32> -> vector<32x256xf32>
    %187 = arith.addf %186, %3 : vector<32x256xf32>
    %cst_102 = arith.constant 0.000000e+00 : f32
    %188 = vector.broadcast %cst_102 : f32 to vector<32x256xf32>
    %189 = arith.maximumf %187, %188 : vector<32x256xf32>
    %190 = arith.index_cast %184 : i32 to index
    %c0_103 = arith.constant 0 : index
    %c0_104 = arith.constant 0 : index
    %191 = vector.load %arg4[%190, %c0_103, %c0_104] : memref<8x32x256xf32, #tpu.memory_space<vmem>>, vector<1x32x256xf32>
    %192 = vector.shape_cast %191 : vector<1x32x256xf32> to vector<32x256xf32>
    %193 = arith.addf %189, %192 : vector<32x256xf32>
    %194 = arith.index_cast %184 : i32 to index
    %c0_105 = arith.constant 0 : index
    %c0_106 = arith.constant 0 : index
    %195 = vector.load %arg4[%194, %c0_105, %c0_106] : memref<8x32x256xf32, #tpu.memory_space<vmem>>, vector<1x32x256xf32>
    %196 = vector.shape_cast %195 : vector<1x32x256xf32> to vector<32x256xf32>
    %197 = vector.shape_cast %193 : vector<32x256xf32> to vector<1x32x256xf32>
    tpu.vector_store %arg4[%194, %c0_105, %c0_106], %197 {strides = array<i32>} : memref<8x32x256xf32, #tpu.memory_space<vmem>>, vector<1x32x256xf32>,
    %c7_i32_107 = arith.constant 7 : i32
    return
  }
  func.func @transform_0(%arg0: i32) -> (i32, i32, i32) {
    %c0_i32 = arith.constant 0 : i32
    %c0_i32_0 = arith.constant 0 : i32
    %c0_i32_1 = arith.constant 0 : i32
    return %c0_i32, %c0_i32_0, %arg0 : i32, i32, i32
  }
  func.func @transform_1(%arg0: i32) -> (i32, i32) {
    %c0_i32 = arith.constant 0 : i32
    %c0_i32_0 = arith.constant 0 : i32
    %c0_i32_1 = arith.constant 0 : i32
    return %c0_i32, %c0_i32_0 : i32, i32
  }
  func.func @transform_2(%arg0: i32) -> (i32, i32) {
    %c0_i32 = arith.constant 0 : i32
    %c0_i32_0 = arith.constant 0 : i32
    %c0_i32_1 = arith.constant 0 : i32
    return %c0_i32, %c0_i32_0 : i32, i32
  }
  func.func @transform_3(%arg0: i32) -> (i32, i32, i32) {
    %c0_i32 = arith.constant 0 : i32
    %c0_i32_0 = arith.constant 0 : i32
    %c0_i32_1 = arith.constant 0 : i32
    return %c0_i32, %c0_i32_0, %arg0 : i32, i32, i32
  }
}

</mosaic_0001>

<bundles_post_ra>
// kernel: tpu_custom_call.1
= control target key start
LH: loop header
LB: loop body
LE: loop exit
PB: predicated region body
PF: predicated region fallthrough
CT: control target
= control target key end

     0   :  { %8 = vsyncpa [#allocation3], 0  ;;  %s2739_s0 = inlined_call_operand.hbm [shape: f32[8,32,512], index: 0, kind: input, shape index: {}]   ;;  %s2740_s1 = inlined_call_operand.vmem [shape: bf16[32,32], index: 1, kind: input, shape index: {}]   ;;  %s2741_s2 = inlined_call_operand.vmem [shape: f32[32,1], index: 2, kind: input, shape index: {}]   ;;  %s2742_s3 = inlined_call_operand.hbm [shape: f32[8,32,512], index: 3, kind: output, shape index: {}]  }
   0x1   :  { %10 = vsyncpa [#allocation3 + $0x1], 0 }
   0x2   :  { %11 = vsyncpa [#allocation4], 0 }
   0x3   :  { %13 = vsyncpa [#allocation4 + $0x1], 0  ;;  %s2036_s12 = smov 0   ;;  %s2038_s13 = smov 0  }
   0x4   :  { %s2040_s14 = smov 0   ;;  %s2042_s15 = smov 0  }
   0x5 LB: > { %s2057_s16 = sadd.s32 4294967295, %s2005_s15   ;;  %s1600_s17 = sadd.s32 4294967294, %s2005_s15   ;;  %s2005_s15 = sphi %s2042_s15, %s2758_s15   ;;  %s2001_s14 = sphi %s2040_s14, %s2757_s14   ;;  %s1997_s13 = sphi %s2038_s13, %s2756_s13   ;;  %s1993_s12 = sphi %s2036_s12, %s2755_s12  }
   0x6   : > { %s2061_s18 = sadd.s32 1, %s2005_s15   ;;  %s26_s19 = sadd.s32 1, %s2001_s14 }
   0x7   : > { %s23_s20 = ssub.s32 %s2005_s15, %s2061_s18  ;;  %p33_p0 = scmp.ne.s32.totalorder %s2001_s14, %s1997_s13 }
   0x8   : > { %p24_p1 = scmp.eq.s32.totalorder %s23_s20, 0  ;;  %p34_p2 = scmp.eq.s32.totalorder %s2005_s15, 0 }
   0x9   : > { %p39_p3 = scmp.ne.s32.totalorder %s1997_s13, %s1993_s12  ;;  %p40_p4 = scmp.eq.s32.totalorder %s2057_s16, 0 }
   0xa   : > { %s2073_s21 = scalar_select %p24_p1, %s2001_s14, %s26_s19  }
   0xb   : > { %p2075_p5 = por %p34_p2, %p33_p0  ;;  %p2079_p6 = por %p40_p4, %p39_p3 }
   0xc   : > { %p105_p7 = scmp.eq.s32.totalorder %s2057_s16, 1  ;;  %p111_p8 = scmp.eq.s32.totalorder %s1600_s17, 1 }
   0xd   : > { %s2746_s23 = scalar_select %p2079_p6, 1, 0 }
   0xe   : > { %p1866_p10 = scmp.lt.s32.totalorder %s2005_s15, 2  ;;  %p2086_p11 = por %p105_p7, %p33_p0 }
   0xf   : > { %p2090_p12 = por %p111_p8, %p39_p3  ;;  %s137_s26 = sand.u32 1, %s2001_s14  }
  0x10   : > { %s2747_s24 = scalar_select %p2086_p11, 1, 0 }
  0x11   : > { %s2748_s25 = scalar_select %p2090_p12, 1, 0 }
  0x12   : > { %s1852_s27 = sshll.u32 %s2005_s15, 8  ;;  %s1603_s28 = sshll.u32 %s137_s26, 9 }
  0x13   : > { %s2099_s4 = scalar_lea.hbm %s2739_s0, %s1852_s27  ;;  %s141_s5 = scalar_lea.vmem [#allocation2], %s1603_s28 }
  0x14   : > { %s148_s6 = sshll.u32 %s141_s5, 4  ;;  %p2103_p13 = pnand %p1866_p10, %p2075_p5  ;;  %s2107_s6 = int_to_ptr.vmem [resolvable:$true] %s148_s6 }
  0x15   : > { %s2110_s8 = scalar_lea.sflag [#allocation3], %s137_s26  ;;  %s1913_s9 = scalar_lea.hbm %s2099_s4, 8192 }
  0x16   : > { %p1914_p1 = scmp.ne.s32.totalorder %s2099_s4, %s1913_s9  ;;  %p1915_p2 = pneg %p2103_p13 }
  0x17   : > { %s1918_s17 = scalar_lea.hbm %s2739_s0, 16384  ;;  %p1919_p5 = scmp.lt.s32.totalorder %s2099_s4, %s2739_s0 }
  0x18   : > { %p1916_p3 = pnand %p1915_p2, %p1914_p1  ;;  %p1920_p7 = scmp.lt.s32.totalorder %s1918_s17, %s1913_s9 }
  0x1a   : > { %p1917_p4 = pneg %p1916_p3  ;;  %p1921_p8 = por %p1920_p7, %p1919_p5 }
  0x1c   : > { %p1922_p10 = pnand %p1921_p8, %p1917_p4 }
  0x1e   : > { %1925 = shalt.err (!%p1922_p10)
}
  0x1f   : > { %s1926_s22 = scalar_lea.vmem %s2107_s6, 8192  ;;  %s2007_s26 = smov [#allocation2]  }
  0x20   : > { %p1927_p9 = scmp.ne.s32.totalorder %s2107_s6, %s1926_s22  ;;  %s1931_s27 = sshll.u32 %s2007_s26, 4  ;;  %s1932_s27 = int_to_ptr.vmem [resolvable:$false] %s1931_s27 }
  0x21   : > { %s1933_s28 = scalar_lea.vmem %s1932_s27, 16384  ;;  %p1934_p3 = scmp.lt.s32.totalorder %s2107_s6, %s1932_s27 }
  0x22   : > { %p1929_p0 = pnand %p1927_p9, %p1915_p2  ;;  %p1935_p12 = scmp.lt.s32.totalorder %s1933_s28, %s1926_s22 }
  0x24   : > { %p1930_p1 = pneg %p1929_p0  ;;  %p1936_p11 = por %p1935_p12, %p1934_p3 }
  0x26   : > { %p1937_p6 = pnand %p1936_p11, %p1930_p1 }
  0x28   : > { %1940 = shalt.err (!%p1937_p6)
}
  0x29   : > { %s2008_s29 = smov 512   ;;  %s2009_s30 = smov 256  }
  0x2a   : > { %s2010_s5 = smov 16   ;;  %p156_p9 = scmp.lt.s32.totalorder %s2005_s15, 3 }
  0x2b   : > { %1861 = dma.hbm_to_vmem [thread:$0]  (!%p2103_p13), %s2099_s4, 8192, %s2107_s6, %s2110_s8, %s2008_s29, %s2009_s30, %s2010_s5  }
  0x2c   : > { %p2750_p0 = scmp.ge.s32.totalorder %s2005_s15, 1 }
  0x2e   : > { %p157_p2 = pnand %p2750_p0, %p156_p9 }
  0x2f   : > { %s2135_s9 = sand.u32 (!%p157_p2), 1, %s1997_s13   ;;  %p2751_p6 = scmp.ne.s32.totalorder (!%p157_p2), %s2746_s23, 0 }
  0x30   : > { %160 = sbr.rel (%p157_p2) target bundleno = 3192 (0xc78), region = 32  ;;  %s1607_s10 = sshll.u32 (!%p157_p2), %s2135_s9, 9 }
  0x31   : > { %s163_s11 = scalar_lea.sflag (!%p157_p2), [#allocation3], %s2135_s9  ;;  %s2139_s17 = scalar_lea.vmem (!%p157_p2), [#allocation2], %s1607_s10 }
  0x35   : > { %1984 = dma.done.wait (%p2751_p6), %s163_s11, 8192  }
  0x36   : > { %1986 = vsyncadd (%p2751_p6), %s163_s11, 4294959104  ;;  %v2011_v0 = vmov 0   ;;  %v225_v1 = vld [vmem:[%s2139_s17 + $0x28] sm:$0xff]  ;;  %v227_v2 = vld [vmem:[%s2139_s17 + $0x38] sm:$0xff]  ;;  %s2152_s23 = scalar_lea.vmem [#allocation5], %s1607_s10  ;;  %vm250_vm0 = vcmask 261120  }
  0x37   : > { %289 = vmatprep.mubr.bf16.mxu0 %v2011_v0  ;;  %1908 = vset.pattern.permute.xlu1 %v2011_v0  ;;  %v224_v3 = vld [vmem:[%s2139_s17 + $0x20] sm:$0xff]  ;;  %233 = vst [vmem:[%s2152_s23 + $0x28] sm:$0xff] %v225_v1  ;;  %235 = vst [vmem:[%s2152_s23 + $0x38] sm:$0xff] %v227_v2  ;;  %v239_v4 = vpack.c.bf16 %v227_v2, %v225_v1  ;;  %v226_v5 = vld [vmem:[%s2139_s17 + $0x30] sm:$0xff]  ;;  %s1853_s4 = sshll.u32 %s2057_s16, 8  ;;  %s1527_s6 = sshll.u32 %s2152_s23, 4  ;;  %s2694_s6 = int_to_ptr.vmem [resolvable:$true] %s1527_s6 }
  0x38   : > { %1907 = vset.pattern.permute.xlu0 %v2011_v0  ;;  %380 = vmatprep.mubr.bf16.mxu1 %v2011_v0  ;;  %232 = vst [vmem:[%s2152_s23 + $0x20] sm:$0xff] %v224_v3  ;;  %v221_v6 = vld [vmem:[%s2139_s17 + $0x8] sm:$0xff]  ;;  %v223_v7 = vld [vmem:[%s2139_s17 + $0x18] sm:$0xff]  ;;  %234 = vst [vmem:[%s2152_s23 + $0x30] sm:$0xff] %v226_v5  ;;  %v238_v8 = vpack.c.bf16 %v226_v5, %v224_v3  ;;  %s2692_s19 = scalar_lea.hbm %s2742_s3, %s1853_s4  ;;  %s1514_s16 = scalar_lea.sflag [#allocation4], %s2135_s9 }
  0x39   : > { %229 = vst [vmem:[%s2152_s23 + $0x8] sm:$0xff] %v221_v6  ;;  %231 = vst [vmem:[%s2152_s23 + $0x18] sm:$0xff] %v223_v7  ;;  %v237_v9 = vpack.c.bf16 %v223_v7, %v221_v6  ;;  %v220_v10 = vld [vmem:[%s2139_s17] sm:$0xff]  ;;  %v222_v11 = vld [vmem:[%s2139_s17 + $0x10] sm:$0xff]  ;;  %269 = vmatprep.subr.bf16.mxu0 %v239_v4  ;;  %s1941_s20 = scalar_lea.vmem %s2694_s6, 8192  ;;  %p2752_p12 = scmp.ne.s32.totalorder %s2747_s24, 0 }
  0x3a   : > { %228 = vst [vmem:[%s2152_s23] sm:$0xff] %v220_v10  ;;  %230 = vst [vmem:[%s2152_s23 + $0x10] sm:$0xff] %v222_v11  ;;  %270 = vmatpush1.bf16.msra.mxu0 %v238_v8  ;;  %v236_v12 = vpack.c.bf16 %v222_v11, %v220_v10  ;;  %v196_v13 = vld [vmem:[%s2741_s2] sm:$0xff]  ;;  %v198_v14 = vld [vmem:[%s2741_s2 + $0x10] sm:$0xff]  ;;  %p1942_p11 = scmp.ne.s32.totalorder %s2694_s6, %s1941_s20  ;;  %s2012_s22 = smov [#allocation5]  }
  0x3b   : > { %271 = vmatprep.subr.bf16.mxu0 %v237_v9  ;;  %202 = vperm.xlu1 %1908, %v196_v13   ;;  %v197_v15 = vld [vmem:[%s2741_s2 + $0x8] sm:$0xff]  ;;  %v2179_v16 = vld [vmem:[%s2740_s1] sm:$0xff]   ;;  %v199_v17 = vld [vmem:[%s2741_s2 + $0x18] sm:$0xff]  ;;  %s1945_s26 = sshll.u32 %s2012_s22, 4  ;;  %s1946_s26 = int_to_ptr.vmem [resolvable:$false] %s1945_s26 }
  0x3c   : > { %212 = vperm.xlu0 %1907, %v198_v14   ;;  %v2190_v18 = vld [vmem:[%s2740_s1 + $0x8] sm:$0xff]   ;;  %v1613_v22 = vld [vmem:[%s2139_s17 + $0x40] sm:$0xff]  ;;  %v1615_v32 = vld [vmem:[%s2139_s17 + $0x50] sm:$0xff]  ;;  %p1943_p13 = pnand %p1942_p11, %p2752_p12  ;;  %s1947_s27 = scalar_lea.vmem %s1946_s26, 16384 }
  0x3d   : > { %v1614_v27 = vld [vmem:[%s2139_s17 + $0x48] sm:$0xff]  ;;  %v1616_v38 = vld [vmem:[%s2139_s17 + $0x58] sm:$0xff]  ;;  %v1617_v43 = vld [vmem:[%s2139_s17 + $0x60] sm:$0xff]  ;;  %p1948_p5 = scmp.lt.s32.totalorder %s2694_s6, %s1946_s26  ;;  %p1949_p7 = scmp.lt.s32.totalorder %s1947_s27, %s1941_s20 }
  0x3e   : > { %272 = vmatpush1.bf16.msra.mxu0 %v236_v12  ;;  %v1618_v50 = vld [vmem:[%s2139_s17 + $0x68] sm:$0xff]  ;;  %v1619_v54 = vld [vmem:[%s2139_s17 + $0x70] sm:$0xff]  ;;  %v1620_v59 = vld [vmem:[%s2139_s17 + $0x78] sm:$0xff]  ;;  %p1944_p4 = pneg %p1943_p13 }
  0x3f   : > { %207 = vperm.xlu1 %1908, %v197_v15   ;;  %v1631_v6 = vld [vmem:[%s2139_s17 + $0x80] sm:$0xff]  ;;  %v1632_v10 = vld [vmem:[%s2139_s17 + $0x88] sm:$0xff]  ;;  %v1633_v15 = vld [vmem:[%s2139_s17 + $0x90] sm:$0xff]  ;;  %p1950_p8 = por %p1949_p7, %p1948_p5 }
  0x40   : > { %217 = vperm.xlu0 %1907, %v199_v17  }
  0x41   : > { %1611 = vmatmul.mubr.msk.bf16.vlgmr.msra.gmra.mxu0 %vm250_vm0, %v2179_v16  ;;  %p1951_p10 = pnand %p1950_p8, %p1944_p4 }
  0x42   : > { %299 = vmatprep.mubr.bf16.mxu0 %v2011_v0 }
  0x49   : > { %1612 = vmatmul.mubr.msk.bf16.gmra.mxu0 %vm250_vm0, %v2190_v18 }
  0x4a   : > { %471 = vmatprep.mubr.bf16.mxu0 %v2011_v0 }
  0xb6   : > { %v2195_v19 = vpop.permute.xlu1 %202 }
  0xb7   : > { %v2205_v33 = vpop.permute.xlu0 %212 }
  0xba   : > { %v2199_v24 = vpop.permute.xlu1 %207 }
  0xbb   : > { %v2215_v48 = vpop.permute.xlu0 %217 }
 0x101   : > { %v291_v20 = vpop.f32.mrf.mxu0 }
 0x102   : > { %v292_v21 = vadd.f32 %v291_v20, %v2195_v19 }
 0x103   : > { %v293_v23 = vpop.f32.mrf.mxu0 }
 0x104   : > { %v310_v25 = vmax.f32 %v292_v21, 0.0  ;;  %v294_v26 = vadd.f32 %v293_v23, %v2195_v19  ;;  %v1634_v23 = vld [vmem:[%s2139_s17 + $0x98] sm:$0xff] }
 0x105   : > { %v295_v28 = vpop.f32.mrf.mxu0 }
 0x106   : > { %v327_v29 = vadd.f32 %v1613_v22, %v310_v25  ;;  %v311_v30 = vmax.f32 %v294_v26, 0.0  ;;  %v296_v31 = vadd.f32 %v295_v28, %v2199_v24 }
 0x107   : > { %v297_v34 = vpop.f32.mrf.mxu0 }
 0x108   : > { %1621 = vst [vmem:[%s2152_s23 + $0x40] sm:$0xff] %v327_v29  ;;  %v328_v35 = vadd.f32 %v1614_v27, %v311_v30  ;;  %v312_v36 = vmax.f32 %v296_v31, 0.0  ;;  %v298_v37 = vadd.f32 %v297_v34, %v2199_v24 }
 0x109   : > { %v301_v39 = vpop.f32.mrf.mxu0 }
 0x10a   : > { %1622 = vst [vmem:[%s2152_s23 + $0x48] sm:$0xff] %v328_v35  ;;  %v329_v40 = vadd.f32 %v1615_v32, %v312_v36  ;;  %v313_v41 = vmax.f32 %v298_v37, 0.0  ;;  %v302_v42 = vadd.f32 %v301_v39, %v2205_v33 }
 0x10b   : > { %v303_v44 = vpop.f32.mrf.mxu0 }
 0x10c   : > { %1623 = vst [vmem:[%s2152_s23 + $0x50] sm:$0xff] %v329_v40  ;;  %v330_v45 = vadd.f32 %v1616_v38, %v313_v41  ;;  %v314_v46 = vmax.f32 %v302_v42, 0.0  ;;  %v304_v47 = vadd.f32 %v303_v44, %v2205_v33  ;;  %v344_v3 = vpack.c.bf16 %v329_v40, %v327_v29  ;;  %v1635_v29 = vld [vmem:[%s2139_s17 + $0xa0] sm:$0xff]  ;;  %v1637_v40 = vld [vmem:[%s2139_s17 + $0xb0] sm:$0xff] }
 0x10d   : > { %v305_v49 = vpop.f32.mrf.mxu0 }
 0x10e   : > { %1624 = vst [vmem:[%s2152_s23 + $0x58] sm:$0xff] %v330_v45  ;;  %v331_v51 = vadd.f32 %v1617_v43, %v314_v46  ;;  %v315_v52 = vmax.f32 %v304_v47, 0.0  ;;  %v306_v53 = vadd.f32 %v305_v49, %v2215_v48  ;;  %v345_v2 = vpack.c.bf16 %v330_v45, %v328_v35  ;;  %v1636_v35 = vld [vmem:[%s2139_s17 + $0xa8] sm:$0xff]  ;;  %v1638_v45 = vld [vmem:[%s2139_s17 + $0xb8] sm:$0xff] }
 0x10f   : > { %v307_v55 = vpop.f32.mrf.mxu0 }
 0x110   : > { %1625 = vst [vmem:[%s2152_s23 + $0x60] sm:$0xff] %v331_v51  ;;  %v316_v56 = vmax.f32 %v306_v53, 0.0  ;;  %v308_v57 = vadd.f32 %v307_v55, %v2215_v48  ;;  %v332_v58 = vadd.f32 %v1618_v50, %v315_v52 }
 0x112   : > { %v333_v60 = vadd.f32 %v1619_v54, %v316_v56  ;;  %v317_v61 = vmax.f32 %v308_v57, 0.0  ;;  %1626 = vst [vmem:[%s2152_s23 + $0x68] sm:$0xff] %v332_v58 }
 0x114   : > { %1627 = vst [vmem:[%s2152_s23 + $0x70] sm:$0xff] %v333_v60  ;;  %v334_v62 = vadd.f32 %v1620_v59, %v317_v61  ;;  %v346_v1 = vpack.c.bf16 %v333_v60, %v331_v51 }
 0x116   : > { %1628 = vst [vmem:[%s2152_s23 + $0x78] sm:$0xff] %v334_v62  ;;  %v347_v63 = vpack.c.bf16 %v334_v62, %v332_v58 }
 0x118   : > { %360 = vmatprep.subr.bf16.mxu1 %v347_v63 }
 0x119   : > { %361 = vmatpush1.bf16.msra.mxu1 %v346_v1 }
 0x11a   : > { %362 = vmatprep.subr.bf16.mxu1 %v345_v2 }
 0x11d   : > { %363 = vmatpush1.bf16.msra.mxu1 %v344_v3 }
 0x120   : > { %1629 = vmatmul.mubr.msk.bf16.vlgmr.msra.gmra.mxu1 %vm250_vm0, %v2179_v16 }
 0x121   : > { %390 = vmatprep.mubr.bf16.mxu1 %v2011_v0 }
 0x128   : > { %1630 = vmatmul.mubr.msk.bf16.gmra.mxu1 %vm250_vm0, %v2190_v18 }
 0x129   : > { %562 = vmatprep.mubr.bf16.mxu1 %v2011_v0 }
 0x1e0   : > { %v382_v4 = vpop.f32.mrf.mxu1 }
 0x1e1   : > { %v383_v5 = vadd.f32 %v382_v4, %v2195_v19 }
 0x1e2   : > { %v384_v7 = vpop.f32.mrf.mxu1 }
 0x1e3   : > { %v401_v8 = vmax.f32 %v383_v5, 0.0  ;;  %v385_v9 = vadd.f32 %v384_v7, %v2195_v19 }
 0x1e4   : > { %v386_v11 = vpop.f32.mrf.mxu1 }
 0x1e5   : > { %v418_v12 = vadd.f32 %v1631_v6, %v401_v8  ;;  %v402_v13 = vmax.f32 %v385_v9, 0.0  ;;  %v387_v14 = vadd.f32 %v386_v11, %v2199_v24  ;;  %v1655_v8 = vld [vmem:[%s2139_s17 + $0xf0] sm:$0xff]  ;;  %v1652_v11 = vld [vmem:[%s2139_s17 + $0xd8] sm:$0xff] }
 0x1e6   : > { %v388_v17 = vpop.f32.mrf.mxu1 }
 0x1e7   : > { %1639 = vst [vmem:[%s2152_s23 + $0x80] sm:$0xff] %v418_v12  ;;  %v419_v20 = vadd.f32 %v1632_v10, %v402_v13  ;;  %v403_v21 = vmax.f32 %v387_v14, 0.0  ;;  %v389_v22 = vadd.f32 %v388_v17, %v2199_v24  ;;  %v1654_v13 = vld [vmem:[%s2139_s17 + $0xe8] sm:$0xff]  ;;  %v1656_v14 = vld [vmem:[%s2139_s17 + $0xf8] sm:$0xff]  ;;  %v1653_v17 = vld [vmem:[%s2139_s17 + $0xe0] sm:$0xff] }
 0x1e8   : > { %v392_v25 = vpop.f32.mrf.mxu1 }
 0x1e9   : > { %1640 = vst [vmem:[%s2152_s23 + $0x88] sm:$0xff] %v419_v20  ;;  %v420_v26 = vadd.f32 %v1633_v15, %v403_v21  ;;  %v404_v27 = vmax.f32 %v389_v22, 0.0  ;;  %v393_v28 = vadd.f32 %v392_v25, %v2205_v33  ;;  %v1650_v21 = vld [vmem:[%s2139_s17 + $0xc8] sm:$0xff]  ;;  %v1651_v25 = vld [vmem:[%s2139_s17 + $0xd0] sm:$0xff] }
 0x1ea   : > { %v394_v30 = vpop.f32.mrf.mxu1 }
 0x1eb   : > { %1641 = vst [vmem:[%s2152_s23 + $0x90] sm:$0xff] %v420_v26  ;;  %v421_v31 = vadd.f32 %v1634_v23, %v404_v27  ;;  %v405_v32 = vmax.f32 %v393_v28, 0.0  ;;  %v395_v34 = vadd.f32 %v394_v30, %v2205_v33  ;;  %v435_v53 = vpack.c.bf16 %v420_v26, %v418_v12 }
 0x1ec   : > { %v396_v36 = vpop.f32.mrf.mxu1 }
 0x1ed   : > { %1642 = vst [vmem:[%s2152_s23 + $0x98] sm:$0xff] %v421_v31  ;;  %v422_v37 = vadd.f32 %v1635_v29, %v405_v32  ;;  %v406_v38 = vmax.f32 %v395_v34, 0.0  ;;  %v397_v39 = vadd.f32 %v396_v36, %v2215_v48  ;;  %v436_v52 = vpack.c.bf16 %v421_v31, %v419_v20  ;;  %v1649_v31 = vld [vmem:[%s2139_s17 + $0xc0] sm:$0xff] }
 0x1ee   : > { %v398_v41 = vpop.f32.mrf.mxu1 }
 0x1ef   : > { %1643 = vst [vmem:[%s2152_s23 + $0xa0] sm:$0xff] %v422_v37  ;;  %v423_v42 = vadd.f32 %v1636_v35, %v406_v38  ;;  %v407_v43 = vmax.f32 %v397_v39, 0.0  ;;  %v399_v44 = vadd.f32 %v398_v41, %v2215_v48 }
 0x1f1   : > { %1644 = vst [vmem:[%s2152_s23 + $0xa8] sm:$0xff] %v423_v42  ;;  %v424_v46 = vadd.f32 %v1637_v40, %v407_v43  ;;  %v408_v47 = vmax.f32 %v399_v44, 0.0 }
 0x1f3   : > { %1645 = vst [vmem:[%s2152_s23 + $0xb0] sm:$0xff] %v424_v46  ;;  %v425_v49 = vadd.f32 %v1638_v45, %v408_v47  ;;  %v437_v51 = vpack.c.bf16 %v424_v46, %v422_v37 }
 0x1f5   : > { %1646 = vst [vmem:[%s2152_s23 + $0xb8] sm:$0xff] %v425_v49  ;;  %v438_v50 = vpack.c.bf16 %v425_v49, %v423_v42 }
 0x1f7   : > { %451 = vmatprep.subr.bf16.mxu0 %v438_v50 }
 0x1f8   : > { %452 = vmatpush1.bf16.msra.mxu0 %v437_v51 }
 0x1f9   : > { %453 = vmatprep.subr.bf16.mxu0 %v436_v52 }
 0x1fc   : > { %454 = vmatpush1.bf16.msra.mxu0 %v435_v53 }
 0x1ff   : > { %1647 = vmatmul.mubr.msk.bf16.vlgmr.msra.gmra.mxu0 %vm250_vm0, %v2179_v16 }
 0x200   : > { %481 = vmatprep.mubr.bf16.mxu0 %v2011_v0 }
 0x207   : > { %1648 = vmatmul.mubr.msk.bf16.gmra.mxu0 %vm250_vm0, %v2190_v18 }
 0x208   : > { %653 = vmatprep.mubr.bf16.mxu0 %v2011_v0 }
 0x2bf   : > { %v473_v54 = vpop.f32.mrf.mxu0 }
 0x2c0   : > { %v474_v10 = vadd.f32 %v473_v54, %v2195_v19 }
 0x2c1   : > { %v475_v55 = vpop.f32.mrf.mxu0 }
 0x2c2   : > { %v476_v1 = vadd.f32 %v475_v55, %v2195_v19  ;;  %v492_v29 = vmax.f32 %v474_v10, 0.0 }
 0x2c3   : > { %v477_v56 = vpop.f32.mrf.mxu0 }
 0x2c4   : > { %v478_v3 = vadd.f32 %v477_v56, %v2199_v24  ;;  %v493_v15 = vmax.f32 %v476_v1, 0.0  ;;  %v2299_v38 = vadd.f32 %v1649_v31, %v492_v29  ;;  %v1674_v1 = vld [vmem:[%s2139_s17 + $0x138] sm:$0xff] }
 0x2c5   : > { %v479_v57 = vpop.f32.mrf.mxu0 }
 0x2c6   : > { %v480_v60 = vadd.f32 %v479_v57, %v2199_v24  ;;  %v494_v22 = vmax.f32 %v478_v3, 0.0  ;;  %v2289_v32 = vadd.f32 %v1650_v21, %v493_v15  ;;  %v1671_v3 = vld [vmem:[%s2139_s17 + $0x120] sm:$0xff] }
 0x2c7   : > { %v483_v58 = vpop.f32.mrf.mxu0 }
 0x2c8   : > { %v484_v62 = vadd.f32 %v483_v58, %v2205_v33  ;;  %v495_v5 = vmax.f32 %v480_v60, 0.0  ;;  %v2293_v35 = vadd.f32 %v1651_v25, %v494_v22  ;;  %v1673_v58 = vld [vmem:[%s2139_s17 + $0x130] sm:$0xff] }
 0x2c9   : > { %v485_v59 = vpop.f32.mrf.mxu0 }
 0x2ca   : > { %v486_v61 = vadd.f32 %v485_v59, %v2205_v33  ;;  %v496_v12 = vmax.f32 %v484_v62, 0.0  ;;  %v2280_v26 = vadd.f32 %v1652_v11, %v495_v5  ;;  %v526_v39 = vpack.c.bf16 %v2293_v35, %v2299_v38  ;;  %v1668_v5 = vld [vmem:[%s2139_s17 + $0x108] sm:$0xff] }
 0x2cb   : > { %v487_v63 = vpop.f32.mrf.mxu0 }
 0x2cc   : > { %v488_v2 = vadd.f32 %v487_v63, %v2215_v48  ;;  %v497_v6 = vmax.f32 %v486_v61, 0.0  ;;  %v2286_v30 = vadd.f32 %v1653_v17, %v496_v12  ;;  %v527_v37 = vpack.c.bf16 %v2280_v26, %v2289_v32  ;;  %v1670_v61 = vld [vmem:[%s2139_s17 + $0x118] sm:$0xff]  ;;  %v1672_v63 = vld [vmem:[%s2139_s17 + $0x128] sm:$0xff] }
 0x2cd   : > { %v489_v4 = vpop.f32.mrf.mxu0 }
 0x2ce   : > { %v498_v7 = vmax.f32 %v488_v2, 0.0  ;;  %v490_v9 = vadd.f32 %v489_v4, %v2215_v48  ;;  %v2282_v27 = vadd.f32 %v1654_v13, %v497_v6 }
 0x2d0   : > { %v499_v20 = vmax.f32 %v490_v9, 0.0  ;;  %v2277_v23 = vadd.f32 %v1655_v8, %v498_v7  ;;  %v1669_v8 = vld [vmem:[%s2139_s17 + $0x110] sm:$0xff] }
 0x2d2   : > { %v2284_v28 = vadd.f32 %v1656_v14, %v499_v20  ;;  %v528_v36 = vpack.c.bf16 %v2277_v23, %v2286_v30  ;;  %v1667_v14 = vld [vmem:[%s2139_s17 + $0x100] sm:$0xff] }
 0x2d4   : > { %v529_v34 = vpack.c.bf16 %v2284_v28, %v2282_v27 }
 0x2d6   : > { %542 = vmatprep.subr.bf16.mxu1 %v529_v34 }
 0x2d7   : > { %543 = vmatpush1.bf16.msra.mxu1 %v528_v36 }
 0x2d8   : > { %544 = vmatprep.subr.bf16.mxu1 %v527_v37 }
 0x2db   : > { %545 = vmatpush1.bf16.msra.mxu1 %v526_v39 }
 0x2de   : > { %1665 = vmatmul.mubr.msk.bf16.vlgmr.msra.gmra.mxu1 %vm250_vm0, %v2179_v16 }
 0x2df   : > { %572 = vmatprep.mubr.bf16.mxu1 %v2011_v0 }
 0x2e6   : > { %1666 = vmatmul.mubr.msk.bf16.gmra.mxu1 %vm250_vm0, %v2190_v18 }
 0x2e7   : > { %744 = vmatprep.mubr.bf16.mxu1 %v2011_v0 }
 0x39e   : > { %v564_v40 = vpop.f32.mrf.mxu1 }
 0x39f   : > { %v565_v60 = vadd.f32 %v564_v40, %v2195_v19 }
 0x3a0   : > { %v566_v41 = vpop.f32.mrf.mxu1 }
 0x3a1   : > { %v567_v51 = vadd.f32 %v566_v41, %v2195_v19  ;;  %v583_v12 = vmax.f32 %v565_v60, 0.0 }
 0x3a2   : > { %v568_v42 = vpop.f32.mrf.mxu1 }
 0x3a3   : > { %v569_v53 = vadd.f32 %v568_v42, %v2199_v24  ;;  %v584_v2 = vmax.f32 %v567_v51, 0.0  ;;  %v2345_v25 = vadd.f32 %v1667_v14, %v583_v12  ;;  %v1685_v14 = vld [vmem:[%s2139_s17 + $0x140] sm:$0xff] }
 0x3a4   : > { %v570_v43 = vpop.f32.mrf.mxu1 }
 0x3a5   : > { %v571_v46 = vadd.f32 %v570_v43, %v2199_v24  ;;  %v585_v6 = vmax.f32 %v569_v53, 0.0  ;;  %v2335_v15 = vadd.f32 %v1668_v5, %v584_v2  ;;  %v1691_v53 = vld [vmem:[%s2139_s17 + $0x170] sm:$0xff] }
 0x3a6   : > { %v574_v44 = vpop.f32.mrf.mxu1 }
 0x3a7   : > { %v575_v49 = vadd.f32 %v574_v44, %v2205_v33  ;;  %v586_v55 = vmax.f32 %v571_v46, 0.0  ;;  %v2339_v20 = vadd.f32 %v1669_v8, %v585_v6 }
 0x3a8   : > { %v576_v45 = vpop.f32.mrf.mxu1 }
 0x3a9   : > { %v577_v47 = vadd.f32 %v576_v45, %v2205_v33  ;;  %v587_v62 = vmax.f32 %v575_v49, 0.0  ;;  %v2326_v9 = vadd.f32 %v1670_v61, %v586_v55  ;;  %v617_v29 = vpack.c.bf16 %v2339_v20, %v2345_v25  ;;  %v1689_v61 = vld [vmem:[%s2139_s17 + $0x160] sm:$0xff] }
 0x3aa   : > { %v578_v50 = vpop.f32.mrf.mxu1 }
 0x3ab   : > { %v579_v52 = vadd.f32 %v578_v50, %v2215_v48  ;;  %v588_v56 = vmax.f32 %v577_v47, 0.0  ;;  %v2332_v13 = vadd.f32 %v1671_v3, %v587_v62  ;;  %v618_v22 = vpack.c.bf16 %v2326_v9, %v2335_v15  ;;  %v1687_v3 = vld [vmem:[%s2139_s17 + $0x150] sm:$0xff] }
 0x3ac   : > { %v580_v54 = vpop.f32.mrf.mxu1 }
 0x3ad   : > { %v589_v57 = vmax.f32 %v579_v52, 0.0  ;;  %v581_v59 = vadd.f32 %v580_v54, %v2215_v48  ;;  %v2328_v10 = vadd.f32 %v1672_v63, %v588_v56  ;;  %v1688_v56 = vld [vmem:[%s2139_s17 + $0x158] sm:$0xff]  ;;  %v1686_v63 = vld [vmem:[%s2139_s17 + $0x148] sm:$0xff] }
 0x3af   : > { %v590_v4 = vmax.f32 %v581_v59, 0.0  ;;  %v2323_v7 = vadd.f32 %v1673_v58, %v589_v57  ;;  %v1690_v58 = vld [vmem:[%s2139_s17 + $0x168] sm:$0xff]  ;;  %v1692_v59 = vld [vmem:[%s2139_s17 + $0x178] sm:$0xff] }
 0x3b1   : > { %v2330_v11 = vadd.f32 %v1674_v1, %v590_v4  ;;  %v619_v21 = vpack.c.bf16 %v2323_v7, %v2332_v13 }
 0x3b3   : > { %v620_v17 = vpack.c.bf16 %v2330_v11, %v2328_v10 }
 0x3b5   : > { %633 = vmatprep.subr.bf16.mxu0 %v620_v17 }
 0x3b6   : > { %634 = vmatpush1.bf16.msra.mxu0 %v619_v21 }
 0x3b7   : > { %635 = vmatprep.subr.bf16.mxu0 %v618_v22 }
 0x3ba   : > { %636 = vmatpush1.bf16.msra.mxu0 %v617_v29 }
 0x3bd   : > { %1683 = vmatmul.mubr.msk.bf16.vlgmr.msra.gmra.mxu0 %vm250_vm0, %v2179_v16 }
 0x3be   : > { %663 = vmatprep.mubr.bf16.mxu0 %v2011_v0 }
 0x3c5   : > { %1684 = vmatmul.mubr.msk.bf16.gmra.mxu0 %vm250_vm0, %v2190_v18 }
 0x3c6   : > { %835 = vmatprep.mubr.bf16.mxu0 %v2011_v0 }
 0x47d   : > { %v655_v31 = vpop.f32.mrf.mxu0 }
 0x47e   : > { %v656_v55 = vadd.f32 %v655_v31, %v2195_v19 }
 0x47f   : > { %v657_v34 = vpop.f32.mrf.mxu0 }
 0x480   : > { %v658_v45 = vadd.f32 %v657_v34, %v2195_v19  ;;  %v674_v8 = vmax.f32 %v656_v55, 0.0 }
 0x481   : > { %v659_v36 = vpop.f32.mrf.mxu0 }
 0x482   : > { %v660_v47 = vadd.f32 %v659_v36, %v2199_v24  ;;  %v675_v60 = vmax.f32 %v658_v45, 0.0  ;;  %v2391_v34 = vadd.f32 %v1685_v14, %v674_v8  ;;  %v1704_v8 = vld [vmem:[%s2139_s17 + $0x188] sm:$0xff] }
 0x483   : > { %v661_v37 = vpop.f32.mrf.mxu0 }
 0x484   : > { %v662_v41 = vadd.f32 %v661_v37, %v2199_v24  ;;  %v676_v1 = vmax.f32 %v660_v47, 0.0  ;;  %v2381_v17 = vadd.f32 %v1686_v63, %v675_v60 }
 0x485   : > { %v665_v39 = vpop.f32.mrf.mxu0 }
 0x486   : > { %v666_v43 = vadd.f32 %v665_v39, %v2205_v33  ;;  %v677_v50 = vmax.f32 %v662_v41, 0.0  ;;  %v2385_v22 = vadd.f32 %v1687_v3, %v676_v1  ;;  %v1707_v1 = vld [vmem:[%s2139_s17 + $0x1a0] sm:$0xff] }
 0x487   : > { %v667_v40 = vpop.f32.mrf.mxu0 }
 0x488   : > { %v668_v42 = vadd.f32 %v667_v40, %v2205_v33  ;;  %v678_v57 = vmax.f32 %v666_v43, 0.0  ;;  %v2372_v4 = vadd.f32 %v1688_v56, %v677_v50  ;;  %v708_v36 = vpack.c.bf16 %v2385_v22, %v2391_v34  ;;  %v1709_v56 = vld [vmem:[%s2139_s17 + $0x1b0] sm:$0xff] }
 0x489   : > { %v669_v44 = vpop.f32.mrf.mxu0 }
 0x48a   : > { %v670_v46 = vadd.f32 %v669_v44, %v2215_v48  ;;  %v679_v51 = vmax.f32 %v668_v42, 0.0  ;;  %v2378_v12 = vadd.f32 %v1689_v61, %v678_v57  ;;  %v709_v31 = vpack.c.bf16 %v2372_v4, %v2381_v17  ;;  %v1708_v61 = vld [vmem:[%s2139_s17 + $0x1a8] sm:$0xff] }
 0x48b   : > { %v671_v49 = vpop.f32.mrf.mxu0 }
 0x48c   : > { %v680_v52 = vmax.f32 %v670_v46, 0.0  ;;  %v672_v54 = vadd.f32 %v671_v49, %v2215_v48  ;;  %v2374_v5 = vadd.f32 %v1690_v58, %v679_v51 }
 0x48e   : > { %v681_v62 = vmax.f32 %v672_v54, 0.0  ;;  %v2369_v2 = vadd.f32 %v1691_v53, %v680_v52 }
 0x490   : > { %v2376_v6 = vadd.f32 %v1692_v59, %v681_v62  ;;  %v710_v29 = vpack.c.bf16 %v2369_v2, %v2378_v12  ;;  %v1706_v59 = vld [vmem:[%s2139_s17 + $0x198] sm:$0xff] }
 0x491   : > { %v1710_v62 = vld [vmem:[%s2139_s17 + $0x1b8] sm:$0xff] }
 0x492   : > { %v711_v21 = vpack.c.bf16 %v2376_v6, %v2374_v5 }
 0x494   : > { %724 = vmatprep.subr.bf16.mxu1 %v711_v21 }
 0x495   : > { %725 = vmatpush1.bf16.msra.mxu1 %v710_v29  ;;  %v1705_v29 = vld [vmem:[%s2139_s17 + $0x190] sm:$0xff] }
 0x496   : > { %726 = vmatprep.subr.bf16.mxu1 %v709_v31 }
 0x499   : > { %727 = vmatpush1.bf16.msra.mxu1 %v708_v36 }
 0x49c   : > { %1701 = vmatmul.mubr.msk.bf16.vlgmr.msra.gmra.mxu1 %vm250_vm0, %v2179_v16 }
 0x49d   : > { %754 = vmatprep.mubr.bf16.mxu1 %v2011_v0 }
 0x4a4   : > { %1702 = vmatmul.mubr.msk.bf16.gmra.mxu1 %vm250_vm0, %v2190_v18 }
 0x4a5   : > { %926 = vmatprep.mubr.bf16.mxu1 %v2011_v0 }
 0x55c   : > { %v746_v37 = vpop.f32.mrf.mxu1 }
 0x55d   : > { %v747_v58 = vadd.f32 %v746_v37, %v2195_v19 }
 0x55e   : > { %v748_v39 = vpop.f32.mrf.mxu1 }
 0x55f   : > { %v749_v49 = vadd.f32 %v748_v39, %v2195_v19  ;;  %v765_v37 = vmax.f32 %v747_v58, 0.0 }
 0x560   : > { %v750_v40 = vpop.f32.mrf.mxu1 }
 0x561   : > { %v751_v51 = vadd.f32 %v750_v40, %v2199_v24  ;;  %v766_v63 = vmax.f32 %v749_v49, 0.0 }
 0x562   : > { %v752_v41 = vpop.f32.mrf.mxu1 }
 0x563   : > { %v753_v44 = vadd.f32 %v752_v41, %v2199_v24  ;;  %v767_v14 = vmax.f32 %v751_v51, 0.0  ;;  %v1703_v41 = vld [vmem:[%s2139_s17 + $0x180] sm:$0xff] }
 0x564   : > { %v756_v42 = vpop.f32.mrf.mxu1 }
 0x565   : > { %v757_v46 = vadd.f32 %v756_v42, %v2205_v33  ;;  %v768_v53 = vmax.f32 %v753_v44, 0.0  ;;  %v2427_v42 = vadd.f32 %v1704_v8, %v766_v63  ;;  %v2431_v44 = vadd.f32 %v1705_v29, %v767_v14  ;;  %v1724_v8 = vld [vmem:[%s2139_s17 + $0x1d8] sm:$0xff] }
 0x566   : > { %v758_v43 = vpop.f32.mrf.mxu1 }
 0x567   : > { %v759_v45 = vadd.f32 %v758_v43, %v2205_v33  ;;  %v769_v60 = vmax.f32 %v757_v46, 0.0  ;;  %v2418_v31 = vadd.f32 %v1706_v59, %v768_v53 }
 0x568   : > { %v760_v47 = vpop.f32.mrf.mxu1 }
 0x569   : > { %v761_v50 = vadd.f32 %v760_v47, %v2215_v48  ;;  %v770_v54 = vmax.f32 %v759_v45, 0.0  ;;  %v2424_v40 = vadd.f32 %v1707_v1, %v769_v60  ;;  %v800_v46 = vpack.c.bf16 %v2418_v31, %v2427_v42 }
 0x56a   : > { %v762_v52 = vpop.f32.mrf.mxu1  ;;  %v2437_v47 = vadd.f32 %v1703_v41, %v765_v37 }
 0x56b   : > { %v771_v55 = vmax.f32 %v761_v50, 0.0  ;;  %v763_v57 = vadd.f32 %v762_v52, %v2215_v48  ;;  %v2420_v36 = vadd.f32 %v1708_v61, %v770_v54  ;;  %v1721_v52 = vld [vmem:[%s2139_s17 + $0x1c0] sm:$0xff]  ;;  %v1723_v61 = vld [vmem:[%s2139_s17 + $0x1d0] sm:$0xff] }
 0x56c   : > { %v799_v49 = vpack.c.bf16 %v2431_v44, %v2437_v47 }
 0x56d   : > { %v772_v3 = vmax.f32 %v763_v57, 0.0  ;;  %v2415_v21 = vadd.f32 %v1709_v56, %v771_v55  ;;  %v1722_v56 = vld [vmem:[%s2139_s17 + $0x1c8] sm:$0xff] }
 0x56f   : > { %v2422_v39 = vadd.f32 %v1710_v62, %v772_v3  ;;  %v801_v45 = vpack.c.bf16 %v2415_v21, %v2424_v40 }
 0x571   : > { %v802_v43 = vpack.c.bf16 %v2422_v39, %v2420_v36 }
 0x573   : > { %815 = vmatprep.subr.bf16.mxu0 %v802_v43  ;;  %v1725_v43 = vld [vmem:[%s2139_s17 + $0x1e0] sm:$0xff] }
 0x574   : > { %816 = vmatpush1.bf16.msra.mxu0 %v801_v45 }
 0x575   : > { %817 = vmatprep.subr.bf16.mxu0 %v800_v46 }
 0x578   : > { %818 = vmatpush1.bf16.msra.mxu0 %v799_v49 }
 0x57b   : > { %1719 = vmatmul.mubr.msk.bf16.vlgmr.msra.gmra.mxu0 %vm250_vm0, %v2179_v16 }
 0x57c   : > { %845 = vmatprep.mubr.bf16.mxu0 %v2011_v0 }
 0x583   : > { %1720 = vmatmul.mubr.msk.bf16.gmra.mxu0 %vm250_vm0, %v2190_v18 }
 0x584   : > { %1015 = vmatprep.mubr.bf16.mxu0 %v2011_v0 }
 0x63b   : > { %v837_v50 = vpop.f32.mrf.mxu0 }
 0x63c   : > { %v838_v51 = vadd.f32 %v837_v50, %v2195_v19 }
 0x63d   : > { %v839_v53 = vpop.f32.mrf.mxu0 }
 0x63e   : > { %v856_v54 = vmax.f32 %v838_v51, 0.0  ;;  %v840_v55 = vadd.f32 %v839_v53, %v2195_v19  ;;  %v1726_v51 = vld [vmem:[%s2139_s17 + $0x1e8] sm:$0xff] }
 0x63f   : > { %v841_v57 = vpop.f32.mrf.mxu0 }
 0x640   : > { %v873_v58 = vadd.f32 %v1721_v52, %v856_v54  ;;  %v857_v59 = vmax.f32 %v840_v55, 0.0  ;;  %v842_v60 = vadd.f32 %v841_v57, %v2199_v24 }
 0x641   : > { %v843_v62 = vpop.f32.mrf.mxu0 }
 0x642   : > { %1729 = vst [vmem:[%s2152_s23 + $0x1c0] sm:$0xff] %v873_v58  ;;  %v874_v63 = vadd.f32 %v1722_v56, %v857_v59  ;;  %v858_v1 = vmax.f32 %v842_v60, 0.0  ;;  %v844_v3 = vadd.f32 %v843_v62, %v2199_v24  ;;  %v1727_v56 = vld [vmem:[%s2139_s17 + $0x1f0] sm:$0xff]  ;;  %v1728_v62 = vld [vmem:[%s2139_s17 + $0x1f8] sm:$0xff] }
 0x643   : > { %v847_v14 = vpop.f32.mrf.mxu0 }
 0x644   : > { %1730 = vst [vmem:[%s2152_s23 + $0x1c8] sm:$0xff] %v874_v63  ;;  %v875_v29 = vadd.f32 %v1723_v61, %v858_v1  ;;  %v859_v37 = vmax.f32 %v844_v3, 0.0  ;;  %v848_v41 = vadd.f32 %v847_v14, %v2205_v33 }
 0x645   : > { %v849_v45 = vpop.f32.mrf.mxu0 }
 0x646   : > { %1731 = vst [vmem:[%s2152_s23 + $0x1d0] sm:$0xff] %v875_v29  ;;  %v876_v46 = vadd.f32 %v1724_v8, %v859_v37  ;;  %v860_v49 = vmax.f32 %v848_v41, 0.0  ;;  %v850_v50 = vadd.f32 %v849_v45, %v2205_v33 }
 0x647   : > { %v851_v52 = vpop.f32.mrf.mxu0 }
 0x648   : > { %1732 = vst [vmem:[%s2152_s23 + $0x1d8] sm:$0xff] %v876_v46  ;;  %v877_v53 = vadd.f32 %v1725_v43, %v860_v49  ;;  %v861_v54 = vmax.f32 %v850_v50, 0.0  ;;  %v852_v55 = vadd.f32 %v851_v52, %v2215_v48  ;;  %v891_v41 = vpack.c.bf16 %v876_v46, %v874_v63 }
 0x649   : > { %v853_v57 = vpop.f32.mrf.mxu0  ;;  %v890_v43 = vpack.c.bf16 %v875_v29, %v873_v58 }
 0x64a   : > { %1733 = vst [vmem:[%s2152_s23 + $0x1e0] sm:$0xff] %v877_v53  ;;  %v878_v59 = vadd.f32 %v1726_v51, %v861_v54  ;;  %v862_v60 = vmax.f32 %v852_v55, 0.0  ;;  %v854_v61 = vadd.f32 %v853_v57, %v2215_v48 }
 0x64c   : > { %1734 = vst [vmem:[%s2152_s23 + $0x1e8] sm:$0xff] %v878_v59  ;;  %v879_v1 = vadd.f32 %v1727_v56, %v862_v60  ;;  %v863_v3 = vmax.f32 %v854_v61, 0.0 }
 0x64e   : > { %1735 = vst [vmem:[%s2152_s23 + $0x1f0] sm:$0xff] %v879_v1  ;;  %v880_v8 = vadd.f32 %v1728_v62, %v863_v3  ;;  %v892_v37 = vpack.c.bf16 %v879_v1, %v877_v53 }
 0x650   : > { %1736 = vst [vmem:[%s2152_s23 + $0x1f8] sm:$0xff] %v880_v8  ;;  %v893_v14 = vpack.c.bf16 %v880_v8, %v878_v59 }
 0x652   : > { %906 = vmatprep.subr.bf16.mxu1 %v893_v14 }
 0x653   : > { %907 = vmatpush1.bf16.msra.mxu1 %v892_v37 }
 0x654   : > { %908 = vmatprep.subr.bf16.mxu1 %v891_v41 }
 0x657   : > { %909 = vmatpush1.bf16.msra.mxu1 %v890_v43 }
 0x65a   : > { %1737 = vmatmul.mubr.msk.bf16.vlgmr.msra.gmra.mxu1 %vm250_vm0, %v2179_v16 }
 0x65b   : > { %936 = vmatprep.mubr.bf16.mxu1 %v2011_v0 }
 0x662   : > { %1738 = vmatmul.mubr.msk.bf16.gmra.mxu1 %vm250_vm0, %v2190_v18 }
 0x663   : > { %1104 = vmatprep.mubr.bf16.mxu1 %v2011_v0 }
 0x71a   : > { %v928_v45 = vpop.f32.mrf.mxu1 }
 0x71b   : > { %v929_v49 = vadd.f32 %v928_v45, %v2195_v19 }
 0x71c   : > { %v930_v63 = vpop.f32.mrf.mxu1 }
 0x71d   : > { %v947_v46 = vmax.f32 %v929_v49, 0.0  ;;  %v931_v58 = vadd.f32 %v930_v63, %v2195_v19 }
 0x71e   : > { %v932_v29 = vpop.f32.mrf.mxu1 }
 0x71f   : > { %v963_v50 = vadd.f32 %v947_v46, %v2437_v47  ;;  %v948_v51 = vmax.f32 %v931_v58, 0.0  ;;  %v933_v52 = vadd.f32 %v932_v29, %v2199_v24 }
 0x720   : > { %v934_v53 = vpop.f32.mrf.mxu1 }
 0x721   : > { %1747 = vst [vmem:[%s2152_s23 + $0x180] sm:$0xff] %v963_v50  ;;  %v964_v54 = vadd.f32 %v948_v51, %v2427_v42  ;;  %v949_v55 = vmax.f32 %v933_v52, 0.0  ;;  %v935_v56 = vadd.f32 %v934_v53, %v2199_v24 }
 0x722   : > { %v938_v57 = vpop.f32.mrf.mxu1 }
 0x723   : > { %1748 = vst [vmem:[%s2152_s23 + $0x188] sm:$0xff] %v964_v54  ;;  %v965_v59 = vadd.f32 %v949_v55, %v2431_v44  ;;  %v950_v60 = vmax.f32 %v935_v56, 0.0  ;;  %v939_v61 = vadd.f32 %v938_v57, %v2205_v33 }
 0x724   : > { %v940_v47 = vpop.f32.mrf.mxu1 }
 0x725   : > { %1749 = vst [vmem:[%s2152_s23 + $0x190] sm:$0xff] %v965_v59  ;;  %v966_v62 = vadd.f32 %v950_v60, %v2418_v31  ;;  %v951_v1 = vmax.f32 %v939_v61, 0.0  ;;  %v941_v42 = vadd.f32 %v940_v47, %v2205_v33  ;;  %v979_v29 = vpack.c.bf16 %v965_v59, %v963_v50 }
 0x726   : > { %v942_v3 = vpop.f32.mrf.mxu1 }
 0x727   : > { %1750 = vst [vmem:[%s2152_s23 + $0x198] sm:$0xff] %v966_v62  ;;  %v967_v8 = vadd.f32 %v951_v1, %v2424_v40  ;;  %v952_v14 = vmax.f32 %v941_v42, 0.0  ;;  %v943_v44 = vadd.f32 %v942_v3, %v2215_v48  ;;  %v980_v58 = vpack.c.bf16 %v966_v62, %v964_v54 }
 0x728   : > { %v944_v37 = vpop.f32.mrf.mxu1 }
 0x729   : > { %1751 = vst [vmem:[%s2152_s23 + $0x1a0] sm:$0xff] %v967_v8  ;;  %v968_v41 = vadd.f32 %v952_v14, %v2420_v36  ;;  %v953_v43 = vmax.f32 %v943_v44, 0.0  ;;  %v945_v45 = vadd.f32 %v944_v37, %v2215_v48 }
 0x72b   : > { %1752 = vst [vmem:[%s2152_s23 + $0x1a8] sm:$0xff] %v968_v41  ;;  %v969_v31 = vadd.f32 %v953_v43, %v2415_v21  ;;  %v954_v49 = vmax.f32 %v945_v45, 0.0 }
 0x72d   : > { %1753 = vst [vmem:[%s2152_s23 + $0x1b0] sm:$0xff] %v969_v31  ;;  %v970_v63 = vadd.f32 %v954_v49, %v2422_v39  ;;  %v981_v40 = vpack.c.bf16 %v969_v31, %v967_v8 }
 0x72f   : > { %1754 = vst [vmem:[%s2152_s23 + $0x1b8] sm:$0xff] %v970_v63  ;;  %v982_v46 = vpack.c.bf16 %v970_v63, %v968_v41 }
 0x731   : > { %995 = vmatprep.subr.bf16.mxu0 %v982_v46 }
 0x732   : > { %996 = vmatpush1.bf16.msra.mxu0 %v981_v40 }
 0x733   : > { %997 = vmatprep.subr.bf16.mxu0 %v980_v58 }
 0x736   : > { %998 = vmatpush1.bf16.msra.mxu0 %v979_v29 }
 0x739   : > { %1755 = vmatmul.mubr.msk.bf16.vlgmr.msra.gmra.mxu0 %vm250_vm0, %v2179_v16 }
 0x73a   : > { %1025 = vmatprep.mubr.bf16.mxu0 %v2011_v0 }
 0x741   : > { %1756 = vmatmul.mubr.msk.bf16.gmra.mxu0 %vm250_vm0, %v2190_v18 }
 0x742   : > { %1193 = vmatprep.mubr.bf16.mxu0 %v2011_v0 }
 0x7f9   : > { %v1017_v21 = vpop.f32.mrf.mxu0 }
 0x7fa   : > { %v1018_v36 = vadd.f32 %v1017_v21, %v2195_v19 }
 0x7fb   : > { %v1019_v39 = vpop.f32.mrf.mxu0 }
 0x7fc   : > { %v1036_v51 = vmax.f32 %v1018_v36, 0.0  ;;  %v1020_v50 = vadd.f32 %v1019_v39, %v2195_v19 }
 0x7fd   : > { %v1021_v52 = vpop.f32.mrf.mxu0 }
 0x7fe   : > { %v1052_v53 = vadd.f32 %v1036_v51, %v2391_v34  ;;  %v1037_v54 = vmax.f32 %v1020_v50, 0.0  ;;  %v1022_v55 = vadd.f32 %v1021_v52, %v2199_v24 }
 0x7ff   : > { %v1023_v56 = vpop.f32.mrf.mxu0 }
 0x800   : > { %1765 = vst [vmem:[%s2152_s23 + $0x140] sm:$0xff] %v1052_v53  ;;  %v1053_v57 = vadd.f32 %v1037_v54, %v2381_v17  ;;  %v1038_v59 = vmax.f32 %v1022_v55, 0.0  ;;  %v1024_v60 = vadd.f32 %v1023_v56, %v2199_v24 }
 0x801   : > { %v1027_v61 = vpop.f32.mrf.mxu0 }
 0x802   : > { %1766 = vst [vmem:[%s2152_s23 + $0x148] sm:$0xff] %v1053_v57  ;;  %v1054_v47 = vadd.f32 %v1038_v59, %v2385_v22  ;;  %v1039_v62 = vmax.f32 %v1024_v60, 0.0  ;;  %v1028_v1 = vadd.f32 %v1027_v61, %v2205_v33 }
 0x803   : > { %v1029_v34 = vpop.f32.mrf.mxu0 }
 0x804   : > { %1767 = vst [vmem:[%s2152_s23 + $0x150] sm:$0xff] %v1054_v47  ;;  %v1055_v42 = vadd.f32 %v1039_v62, %v2372_v4  ;;  %v1040_v3 = vmax.f32 %v1028_v1, 0.0  ;;  %v1030_v17 = vadd.f32 %v1029_v34, %v2205_v33  ;;  %v1068_v40 = vpack.c.bf16 %v1054_v47, %v1052_v53 }
 0x805   : > { %v1031_v8 = vpop.f32.mrf.mxu0 }
 0x806   : > { %1768 = vst [vmem:[%s2152_s23 + $0x158] sm:$0xff] %v1055_v42  ;;  %v1056_v14 = vadd.f32 %v1040_v3, %v2378_v12  ;;  %v1041_v44 = vmax.f32 %v1030_v17, 0.0  ;;  %v1032_v22 = vadd.f32 %v1031_v8, %v2215_v48  ;;  %v1069_v46 = vpack.c.bf16 %v1055_v42, %v1053_v57 }
 0x807   : > { %v1033_v37 = vpop.f32.mrf.mxu0 }
 0x808   : > { %1769 = vst [vmem:[%s2152_s23 + $0x160] sm:$0xff] %v1056_v14  ;;  %v1057_v41 = vadd.f32 %v1041_v44, %v2374_v5  ;;  %v1042_v43 = vmax.f32 %v1032_v22, 0.0  ;;  %v1034_v45 = vadd.f32 %v1033_v37, %v2215_v48 }
 0x80a   : > { %1770 = vst [vmem:[%s2152_s23 + $0x168] sm:$0xff] %v1057_v41  ;;  %v1058_v4 = vadd.f32 %v1042_v43, %v2369_v2  ;;  %v1043_v31 = vmax.f32 %v1034_v45, 0.0 }
 0x80c   : > { %1771 = vst [vmem:[%s2152_s23 + $0x170] sm:$0xff] %v1058_v4  ;;  %v1059_v49 = vadd.f32 %v1043_v31, %v2376_v6  ;;  %v1070_v12 = vpack.c.bf16 %v1058_v4, %v1056_v14 }
 0x80e   : > { %1772 = vst [vmem:[%s2152_s23 + $0x178] sm:$0xff] %v1059_v49  ;;  %v1071_v63 = vpack.c.bf16 %v1059_v49, %v1057_v41 }
 0x810   : > { %1084 = vmatprep.subr.bf16.mxu1 %v1071_v63 }
 0x811   : > { %1085 = vmatpush1.bf16.msra.mxu1 %v1070_v12 }
 0x812   : > { %1086 = vmatprep.subr.bf16.mxu1 %v1069_v46 }
 0x815   : > { %1087 = vmatpush1.bf16.msra.mxu1 %v1068_v40 }
 0x818   : > { %1773 = vmatmul.mubr.msk.bf16.vlgmr.msra.gmra.mxu1 %vm250_vm0, %v2179_v16 }
 0x819   : > { %1114 = vmatprep.mubr.bf16.mxu1 %v2011_v0 }
 0x820   : > { %1774 = vmatmul.mubr.msk.bf16.gmra.mxu1 %vm250_vm0, %v2190_v18 }
 0x821   : > { %1282 = vmatprep.mubr.bf16.mxu1 %v2011_v0 }
 0x8d8   : > { %v1106_v2 = vpop.f32.mrf.mxu1 }
 0x8d9   : > { %v1107_v5 = vadd.f32 %v1106_v2, %v2195_v19 }
 0x8da   : > { %v1108_v6 = vpop.f32.mrf.mxu1 }
 0x8db   : > { %v1125_v58 = vmax.f32 %v1107_v5, 0.0  ;;  %v1109_v29 = vadd.f32 %v1108_v6, %v2195_v19 }
 0x8dc   : > { %v1110_v21 = vpop.f32.mrf.mxu1 }
 0x8dd   : > { %v1141_v36 = vadd.f32 %v1125_v58, %v2345_v25  ;;  %v1126_v16 = vmax.f32 %v1109_v29, 0.0  ;;  %v1111_v39 = vadd.f32 %v1110_v21, %v2199_v24 }
 0x8de   : > { %v1112_v51 = vpop.f32.mrf.mxu1 }
 0x8df   : > { %1783 = vst [vmem:[%s2152_s23 + $0x100] sm:$0xff] %v1141_v36  ;;  %v1142_v18 = vadd.f32 %v1126_v16, %v2335_v15  ;;  %v1127_v50 = vmax.f32 %v1111_v39, 0.0  ;;  %v1113_v52 = vadd.f32 %v1112_v51, %v2199_v24 }
 0x8e0   : > { %v1116_v53 = vpop.f32.mrf.mxu1 }
 0x8e1   : > { %1784 = vst [vmem:[%s2152_s23 + $0x108] sm:$0xff] %v1142_v18  ;;  %v1143_v54 = vadd.f32 %v1127_v50, %v2339_v20  ;;  %v1128_v55 = vmax.f32 %v1113_v52, 0.0  ;;  %v1117_v56 = vadd.f32 %v1116_v53, %v2205_v33 }
 0x8e2   : > { %v1118_v25 = vpop.f32.mrf.mxu1 }
 0x8e3   : > { %1785 = vst [vmem:[%s2152_s23 + $0x110] sm:$0xff] %v1143_v54  ;;  %v1144_v57 = vadd.f32 %v1128_v55, %v2326_v9  ;;  %v1129_v59 = vmax.f32 %v1117_v56, 0.0  ;;  %v1119_v15 = vadd.f32 %v1118_v25, %v2205_v33  ;;  %v1157_v44 = vpack.c.bf16 %v1143_v54, %v1141_v36 }
 0x8e4   : > { %v1120_v60 = vpop.f32.mrf.mxu1 }
 0x8e5   : > { %1786 = vst [vmem:[%s2152_s23 + $0x118] sm:$0xff] %v1144_v57  ;;  %v1145_v61 = vadd.f32 %v1129_v59, %v2332_v13  ;;  %v1130_v47 = vmax.f32 %v1119_v15, 0.0  ;;  %v1121_v20 = vadd.f32 %v1120_v60, %v2215_v48  ;;  %v1158_v14 = vpack.c.bf16 %v1144_v57, %v1142_v18  ;;  %v1811_v15 = vld [vmem:[%s2152_s23 + $0x80] sm:$0xff] }
 0x8e6   : > { %v1122_v62 = vpop.f32.mrf.mxu1 }
 0x8e7   : > { %1787 = vst [vmem:[%s2152_s23 + $0x120] sm:$0xff] %v1145_v61  ;;  %v1146_v1 = vadd.f32 %v1130_v47, %v2328_v10  ;;  %v1131_v34 = vmax.f32 %v1121_v20, 0.0  ;;  %v1123_v42 = vadd.f32 %v1122_v62, %v2215_v48  ;;  %v2564_v10 = vld [vmem:[%s2740_s1] sm:$0xff]   ;;  %v1812_v62 = vld [vmem:[%s2152_s23 + $0x88] sm:$0xff] }
 0x8e9   : > { %1788 = vst [vmem:[%s2152_s23 + $0x128] sm:$0xff] %v1146_v1  ;;  %v1147_v9 = vadd.f32 %v1131_v34, %v2323_v7  ;;  %v1132_v3 = vmax.f32 %v1123_v42, 0.0  ;;  %v2572_v7 = vld [vmem:[%s2740_s1 + $0x8] sm:$0xff]  }
 0x8eb   : > { %1789 = vst [vmem:[%s2152_s23 + $0x130] sm:$0xff] %v1147_v9  ;;  %v1148_v17 = vadd.f32 %v1132_v3, %v2330_v11  ;;  %v1159_v13 = vpack.c.bf16 %v1147_v9, %v1145_v61  ;;  %v1813_v3 = vld [vmem:[%s2152_s23 + $0x90] sm:$0xff] }
 0x8ed   : > { %1790 = vst [vmem:[%s2152_s23 + $0x138] sm:$0xff] %v1148_v17  ;;  %v1160_v8 = vpack.c.bf16 %v1148_v17, %v1146_v1 }
 0x8ef   : > { %1173 = vmatprep.subr.bf16.mxu0 %v1160_v8 }
 0x8f0   : > { %1174 = vmatpush1.bf16.msra.mxu0 %v1159_v13 }
 0x8f1   : > { %1175 = vmatprep.subr.bf16.mxu0 %v1158_v14 }
 0x8f4   : > { %1176 = vmatpush1.bf16.msra.mxu0 %v1157_v44  ;;  %v1814_v44 = vld [vmem:[%s2152_s23 + $0x98] sm:$0xff] }
 0x8f7   : > { %1791 = vmatmul.mubr.msk.bf16.vlgmr.msra.gmra.mxu0 %vm250_vm0, %v2564_v10 }
 0x8f8   : > { %1203 = vmatprep.mubr.bf16.mxu0 %v2011_v0 }
 0x8ff   : > { %1792 = vmatmul.mubr.msk.bf16.gmra.mxu0 %vm250_vm0, %v2572_v7 }
 0x900   : > { %1371 = vmatprep.mubr.bf16.mxu0 %v2011_v0 }
 0x9b7   : > { %v1195_v11 = vpop.f32.mrf.mxu0 }
 0x9b8   : > { %v1196_v22 = vadd.f32 %v1195_v11, %v2195_v19 }
 0x9b9   : > { %v1197_v37 = vpop.f32.mrf.mxu0 }
 0x9ba   : > { %v1214_v41 = vmax.f32 %v1196_v22, 0.0  ;;  %v1198_v43 = vadd.f32 %v1197_v37, %v2195_v19 }
 0x9bb   : > { %v1199_v45 = vpop.f32.mrf.mxu0 }
 0x9bc   : > { %v1230_v4 = vadd.f32 %v1214_v41, %v2299_v38  ;;  %v1215_v31 = vmax.f32 %v1198_v43, 0.0  ;;  %v1200_v49 = vadd.f32 %v1199_v45, %v2199_v24  ;;  %v1815_v43 = vld [vmem:[%s2152_s23 + $0xa0] sm:$0xff] }
 0x9bd   : > { %v1201_v63 = vpop.f32.mrf.mxu0 }
 0x9be   : > { %1801 = vst [vmem:[%s2152_s23 + $0xc0] sm:$0xff] %v1230_v4  ;;  %v1231_v12 = vadd.f32 %v1215_v31, %v2289_v32  ;;  %v1216_v46 = vmax.f32 %v1200_v49, 0.0  ;;  %v1202_v40 = vadd.f32 %v1201_v63, %v2199_v24  ;;  %v1816_v63 = vld [vmem:[%s2152_s23 + $0xa8] sm:$0xff] }
 0x9bf   : > { %v1205_v2 = vpop.f32.mrf.mxu0 }
 0x9c0   : > { %1802 = vst [vmem:[%s2152_s23 + $0xc8] sm:$0xff] %v1231_v12  ;;  %v1232_v5 = vadd.f32 %v1216_v46, %v2293_v35  ;;  %v1217_v6 = vmax.f32 %v1202_v40, 0.0  ;;  %v1206_v58 = vadd.f32 %v1205_v2, %v2205_v33 }
 0x9c1   : > { %v1207_v38 = vpop.f32.mrf.mxu0 }
 0x9c2   : > { %1803 = vst [vmem:[%s2152_s23 + $0xd0] sm:$0xff] %v1232_v5  ;;  %v1233_v29 = vadd.f32 %v1217_v6, %v2280_v26  ;;  %v1218_v21 = vmax.f32 %v1206_v58, 0.0  ;;  %v1208_v32 = vadd.f32 %v1207_v38, %v2205_v33  ;;  %v1246_v25 = vpack.c.bf16 %v1232_v5, %v1230_v4  ;;  %v1817_v5 = vld [vmem:[%s2152_s23 + $0xb0] sm:$0xff]  ;;  %v1818_v38 = vld [vmem:[%s2152_s23 + $0xb8] sm:$0xff] }
 0x9c3   : > { %v1209_v36 = vpop.f32.mrf.mxu0 }
 0x9c4   : > { %1804 = vst [vmem:[%s2152_s23 + $0xd8] sm:$0xff] %v1233_v29  ;;  %v1234_v16 = vadd.f32 %v1218_v21, %v2286_v30  ;;  %v1219_v39 = vmax.f32 %v1208_v32, 0.0  ;;  %v1210_v35 = vadd.f32 %v1209_v36, %v2215_v48  ;;  %v1247_v56 = vpack.c.bf16 %v1233_v29, %v1231_v12 }
 0x9c5   : > { %v1211_v51 = vpop.f32.mrf.mxu0 }
 0x9c6   : > { %1805 = vst [vmem:[%s2152_s23 + $0xe0] sm:$0xff] %v1234_v16  ;;  %v1235_v18 = vadd.f32 %v1219_v39, %v2282_v27  ;;  %v1220_v50 = vmax.f32 %v1210_v35, 0.0  ;;  %v1212_v52 = vadd.f32 %v1211_v51, %v2215_v48 }
 0x9c8   : > { %1806 = vst [vmem:[%s2152_s23 + $0xe8] sm:$0xff] %v1235_v18  ;;  %v1236_v26 = vadd.f32 %v1220_v50, %v2277_v23  ;;  %v1221_v53 = vmax.f32 %v1212_v52, 0.0  ;;  %v1829_v52 = vld [vmem:[%s2152_s23 + $0x40] sm:$0xff] }
 0x9ca   : > { %1807 = vst [vmem:[%s2152_s23 + $0xf0] sm:$0xff] %v1236_v26  ;;  %v1237_v54 = vadd.f32 %v1221_v53, %v2284_v28  ;;  %v1248_v30 = vpack.c.bf16 %v1236_v26, %v1234_v16 }
 0x9cc   : > { %1808 = vst [vmem:[%s2152_s23 + $0xf8] sm:$0xff] %v1237_v54  ;;  %v1249_v55 = vpack.c.bf16 %v1237_v54, %v1235_v18 }
 0x9ce   : > { %1262 = vmatprep.subr.bf16.mxu1 %v1249_v55 }
 0x9cf   : > { %1263 = vmatpush1.bf16.msra.mxu1 %v1248_v30  ;;  %v1830_v30 = vld [vmem:[%s2152_s23 + $0x48] sm:$0xff] }
 0x9d0   : > { %1264 = vmatprep.subr.bf16.mxu1 %v1247_v56 }
 0x9d3   : > { %1265 = vmatpush1.bf16.msra.mxu1 %v1246_v25 }
 0x9d6   : > { %1809 = vmatmul.mubr.msk.bf16.vlgmr.msra.gmra.mxu1 %vm250_vm0, %v2564_v10 }
 0x9d7   : > { %1292 = vmatprep.mubr.bf16.mxu1 %v2011_v0 }
 0x9de   : > { %1810 = vmatmul.mubr.msk.bf16.gmra.mxu1 %vm250_vm0, %v2572_v7 }
 0x9df   : > { %1460 = vmatprep.mubr.bf16.mxu1 %v2011_v0 }
 0xa96   : > { %v1284_v23 = vpop.f32.mrf.mxu1 }
 0xa97   : > { %v1285_v27 = vadd.f32 %v1284_v23, %v2195_v19 }
 0xa98   : > { %v1286_v28 = vpop.f32.mrf.mxu1 }
 0xa99   : > { %v1303_v57 = vmax.f32 %v1285_v27, 0.0  ;;  %v1287_v59 = vadd.f32 %v1286_v28, %v2195_v19  ;;  %v1831_v28 = vld [vmem:[%s2152_s23 + $0x50] sm:$0xff] }
 0xa9a   : > { %v1288_v60 = vpop.f32.mrf.mxu1 }
 0xa9b   : > { %v1319_v61 = vadd.f32 %v1811_v15, %v1303_v57  ;;  %v1304_v47 = vmax.f32 %v1287_v59, 0.0  ;;  %v1289_v20 = vadd.f32 %v1288_v60, %v2199_v24 }
 0xa9c   : > { %v1290_v1 = vpop.f32.mrf.mxu1 }
 0xa9d   : > { %1819 = vst [vmem:[%s2152_s23 + $0x80] sm:$0xff] %v1319_v61  ;;  %v1320_v34 = vadd.f32 %v1812_v62, %v1304_v47  ;;  %v1305_v42 = vmax.f32 %v1289_v20, 0.0  ;;  %v1291_v9 = vadd.f32 %v1290_v1, %v2199_v24 }
 0xa9e   : > { %v1294_v17 = vpop.f32.mrf.mxu1 }
 0xa9f   : > { %1820 = vst [vmem:[%s2152_s23 + $0x88] sm:$0xff] %v1320_v34  ;;  %v1321_v8 = vadd.f32 %v1813_v3, %v1305_v42  ;;  %v1306_v13 = vmax.f32 %v1291_v9, 0.0  ;;  %v1295_v14 = vadd.f32 %v1294_v17, %v2205_v33 }
 0xaa0   : > { %v1296_v11 = vpop.f32.mrf.mxu1 }
 0xaa1   : > { %1821 = vst [vmem:[%s2152_s23 + $0x90] sm:$0xff] %v1321_v8  ;;  %v1322_v22 = vadd.f32 %v1814_v44, %v1306_v13  ;;  %v1307_v37 = vmax.f32 %v1295_v14, 0.0  ;;  %v1297_v41 = vadd.f32 %v1296_v11, %v2205_v33  ;;  %v1335_v16 = vpack.c.bf16 %v1321_v8, %v1319_v61  ;;  %v1832_v61 = vld [vmem:[%s2152_s23 + $0x58] sm:$0xff]  ;;  %v1834_v8 = vld [vmem:[%s2152_s23 + $0x68] sm:$0xff] }
 0xaa2   : > { %v1298_v45 = vpop.f32.mrf.mxu1 }
 0xaa3   : > { %1822 = vst [vmem:[%s2152_s23 + $0x98] sm:$0xff] %v1322_v22  ;;  %v1323_v4 = vadd.f32 %v1815_v43, %v1307_v37  ;;  %v1308_v31 = vmax.f32 %v1297_v41, 0.0  ;;  %v1299_v49 = vadd.f32 %v1298_v45, %v2215_v48  ;;  %v1336_v36 = vpack.c.bf16 %v1322_v22, %v1320_v34  ;;  %v1833_v34 = vld [vmem:[%s2152_s23 + $0x60] sm:$0xff]  ;;  %v1835_v22 = vld [vmem:[%s2152_s23 + $0x70] sm:$0xff]  ;;  %v1836_v43 = vld [vmem:[%s2152_s23 + $0x78] sm:$0xff] }
 0xaa4   : > { %v1300_v12 = vpop.f32.mrf.mxu1 }
 0xaa5   : > { %1823 = vst [vmem:[%s2152_s23 + $0xa0] sm:$0xff] %v1323_v4  ;;  %v1324_v46 = vadd.f32 %v1816_v63, %v1308_v31  ;;  %v1309_v40 = vmax.f32 %v1299_v49, 0.0  ;;  %v1301_v2 = vadd.f32 %v1300_v12, %v2215_v48 }
 0xaa7   : > { %1824 = vst [vmem:[%s2152_s23 + $0xa8] sm:$0xff] %v1324_v46  ;;  %v1325_v6 = vadd.f32 %v1817_v5, %v1309_v40  ;;  %v1310_v58 = vmax.f32 %v1301_v2, 0.0  ;;  %v1489_v40 = vld [vmem:[%s2152_s23] sm:$0xff] }
 0xaa9   : > { %1825 = vst [vmem:[%s2152_s23 + $0xb0] sm:$0xff] %v1325_v6  ;;  %v1326_v29 = vadd.f32 %v1818_v38, %v1310_v58  ;;  %v1337_v32 = vpack.c.bf16 %v1325_v6, %v1323_v4  ;;  %v1490_v58 = vld [vmem:[%s2152_s23 + $0x8] sm:$0xff] }
 0xaab   : > { %1826 = vst [vmem:[%s2152_s23 + $0xb8] sm:$0xff] %v1326_v29  ;;  %v1338_v21 = vpack.c.bf16 %v1326_v29, %v1324_v46 }
 0xaad   : > { %1351 = vmatprep.subr.bf16.mxu0 %v1338_v21  ;;  %v1491_v21 = vld [vmem:[%s2152_s23 + $0x10] sm:$0xff] }
 0xaae   : > { %1352 = vmatpush1.bf16.msra.mxu0 %v1337_v32 }
 0xaaf   : > { %1353 = vmatprep.subr.bf16.mxu0 %v1336_v36 }
 0xab2   : > { %1354 = vmatpush1.bf16.msra.mxu0 %v1335_v16 }
 0xab5   : > { %1827 = vmatmul.mubr.msk.bf16.vlgmr.msra.gmra.mxu0 %vm250_vm0, %v2564_v10 }
 0xab6   : > { %1381 = vmatprep.mubr.bf16.mxu0 %v2011_v0 }
 0xabd   : > { %1828 = vmatmul.mubr.msk.bf16.gmra.mxu0 %vm250_vm0, %v2572_v7 }
 0xb75   : > { %v1373_v39 = vpop.f32.mrf.mxu0 }
 0xb76   : > { %v1374_v35 = vadd.f32 %v1373_v39, %v2195_v19  ;;  %v1492_v39 = vld [vmem:[%s2152_s23 + $0x18] sm:$0xff] }
 0xb77   : > { %v1375_v51 = vpop.f32.mrf.mxu0 }
 0xb78   : > { %v1392_v18 = vmax.f32 %v1374_v35, 0.0  ;;  %v1376_v50 = vadd.f32 %v1375_v51, %v2195_v19 }
 0xb79   : > { %v1377_v26 = vpop.f32.mrf.mxu0 }
 0xb7a   : > { %v1408_v53 = vadd.f32 %v1829_v52, %v1392_v18  ;;  %v1393_v54 = vmax.f32 %v1376_v50, 0.0  ;;  %v1378_v55 = vadd.f32 %v1377_v26, %v2199_v24  ;;  %v1493_v50 = vld [vmem:[%s2152_s23 + $0x20] sm:$0xff] }
 0xb7b   : > { %v1379_v56 = vpop.f32.mrf.mxu0 }
 0xb7c   : > { %1837 = vst [vmem:[%s2152_s23 + $0x40] sm:$0xff] %v1408_v53  ;;  %v1409_v25 = vadd.f32 %v1830_v30, %v1393_v54  ;;  %v1394_v23 = vmax.f32 %v1378_v55, 0.0  ;;  %v1380_v27 = vadd.f32 %v1379_v56, %v2199_v24 }
 0xb7d   : > { %v1383_v57 = vpop.f32.mrf.mxu0 }
 0xb7e   : > { %1838 = vst [vmem:[%s2152_s23 + $0x48] sm:$0xff] %v1409_v25  ;;  %v1410_v59 = vadd.f32 %v1831_v28, %v1394_v23  ;;  %v1395_v15 = vmax.f32 %v1380_v27, 0.0  ;;  %v1384_v60 = vadd.f32 %v1383_v57, %v2205_v33  ;;  %v1495_v23 = vld [vmem:[%s2152_s23 + $0x30] sm:$0xff] }
 0xb7f   : > { %v1385_v47 = vpop.f32.mrf.mxu0 }
 0xb80   : > { %1839 = vst [vmem:[%s2152_s23 + $0x50] sm:$0xff] %v1410_v59  ;;  %v1411_v20 = vadd.f32 %v1832_v61, %v1395_v15  ;;  %v1396_v62 = vmax.f32 %v1384_v60, 0.0  ;;  %v1386_v1 = vadd.f32 %v1385_v47, %v2205_v33  ;;  %v1424_v63 = vpack.c.bf16 %v1410_v59, %v1408_v53  ;;  %v1496_v59 = vld [vmem:[%s2152_s23 + $0x38] sm:$0xff] }
 0xb81   : > { %v1387_v42 = vpop.f32.mrf.mxu0 }
 0xb82   : > { %1840 = vst [vmem:[%s2152_s23 + $0x58] sm:$0xff] %v1411_v20  ;;  %v1412_v9 = vadd.f32 %v1833_v34, %v1396_v62  ;;  %v1397_v3 = vmax.f32 %v1386_v1, 0.0  ;;  %v1388_v17 = vadd.f32 %v1387_v42, %v2215_v48  ;;  %v1425_v49 = vpack.c.bf16 %v1411_v20, %v1409_v25 }
 0xb83   : > { %v1389_v13 = vpop.f32.mrf.mxu0 }
 0xb84   : > { %1841 = vst [vmem:[%s2152_s23 + $0x60] sm:$0xff] %v1412_v9  ;;  %v1413_v14 = vadd.f32 %v1834_v8, %v1397_v3  ;;  %v1398_v44 = vmax.f32 %v1388_v17, 0.0  ;;  %v1390_v11 = vadd.f32 %v1389_v13, %v2215_v48 }
 0xb86   : > { %1842 = vst [vmem:[%s2152_s23 + $0x68] sm:$0xff] %v1413_v14  ;;  %v1414_v37 = vadd.f32 %v1835_v22, %v1398_v44  ;;  %v1399_v41 = vmax.f32 %v1390_v11, 0.0 }
 0xb88   : > { %1843 = vst [vmem:[%s2152_s23 + $0x70] sm:$0xff] %v1414_v37  ;;  %v1415_v45 = vadd.f32 %v1836_v43, %v1399_v41  ;;  %v1426_v31 = vpack.c.bf16 %v1414_v37, %v1412_v9 }
 0xb8a   : > { %1844 = vst [vmem:[%s2152_s23 + $0x78] sm:$0xff] %v1415_v45  ;;  %v1427_v4 = vpack.c.bf16 %v1415_v45, %v1413_v14 }
 0xb8c   : > { %1440 = vmatprep.subr.bf16.mxu1 %v1427_v4 }
 0xb8d   : > { %1441 = vmatpush1.bf16.msra.mxu1 %v1426_v31 }
 0xb8e   : > { %1442 = vmatprep.subr.bf16.mxu1 %v1425_v49 }
 0xb91   : > { %1443 = vmatpush1.bf16.msra.mxu1 %v1424_v63 }
 0xb94   : > { %1845 = vmatmul.mubr.msk.bf16.vlgmr.msra.gmra.mxu1 %vm250_vm0, %v2564_v10 }
 0xb95   : > { %1470 = vmatprep.mubr.bf16.mxu1 %v2011_v0 }
 0xb9c   : > { %1846 = vmatmul.mubr.msk.bf16.gmra.mxu1 %vm250_vm0, %v2572_v7 }
 0xc54   : > { %v1462_v12 = vpop.f32.mrf.mxu1 }
 0xc55   : > { %v1463_v46 = vadd.f32 %v1462_v12, %v2195_v19 }
 0xc56   : > { %v1464_v2 = vpop.f32.mrf.mxu1 }
 0xc57   : > { %v1481_v5 = vmax.f32 %v1463_v46, 0.0  ;;  %v1465_v6 = vadd.f32 %v1464_v2, %v2195_v19 }
 0xc58   : > { %v1466_v38 = vpop.f32.mrf.mxu1 }
 0xc59   : > { %v1497_v10 = vadd.f32 %v1489_v40, %v1481_v5  ;;  %v1482_v29 = vmax.f32 %v1465_v6, 0.0  ;;  %v1467_v0 = vadd.f32 %v1466_v38, %v2199_v24 }
 0xc5a   : > { %v1468_v7 = vpop.f32.mrf.mxu1 }
 0xc5b   : > { %1505 = vst [vmem:[%s2152_s23] sm:$0xff] %v1497_v10  ;;  %v1498_v32 = vadd.f32 %v1490_v58, %v1482_v29  ;;  %v1483_v36 = vmax.f32 %v1467_v0, 0.0  ;;  %v1469_v16 = vadd.f32 %v1468_v7, %v2199_v24  ;;  %v1494_v24 = vld [vmem:[%s2152_s23 + $0x28] sm:$0xff] }
 0xc5c   : > { %v1472_v35 = vpop.f32.mrf.mxu1 }
 0xc5d   : > { %1506 = vst [vmem:[%s2152_s23 + $0x8] sm:$0xff] %v1498_v32  ;;  %v1499_v19 = vadd.f32 %v1491_v21, %v1483_v36  ;;  %v1484_v51 = vmax.f32 %v1469_v16, 0.0  ;;  %v1473_v18 = vadd.f32 %v1472_v35, %v2205_v33 }
 0xc5e   : > { %v1474_v52 = vpop.f32.mrf.mxu1 }
 0xc5f   : > { %1507 = vst [vmem:[%s2152_s23 + $0x10] sm:$0xff] %v1499_v19  ;;  %v1500_v26 = vadd.f32 %v1492_v39, %v1484_v51  ;;  %v1485_v53 = vmax.f32 %v1473_v18, 0.0  ;;  %v1475_v54 = vadd.f32 %v1474_v52, %v2205_v33 }
 0xc60   : > { %v1476_v55 = vpop.f32.mrf.mxu1 }
 0xc61   : > { %1508 = vst [vmem:[%s2152_s23 + $0x18] sm:$0xff] %v1500_v26  ;;  %v1501_v30 = vadd.f32 %v1493_v50, %v1485_v53  ;;  %v1486_v56 = vmax.f32 %v1475_v54, 0.0  ;;  %v1477_v25 = vadd.f32 %v1476_v55, %v2215_v48 }
 0xc62   : > { %v1478_v27 = vpop.f32.mrf.mxu1 }
 0xc63   : > { %1509 = vst [vmem:[%s2152_s23 + $0x20] sm:$0xff] %v1501_v30  ;;  %v1502_v28 = vadd.f32 %v1494_v24, %v1486_v56  ;;  %v1487_v57 = vmax.f32 %v1477_v25, 0.0  ;;  %v1479_v33 = vadd.f32 %v1478_v27, %v2215_v48 }
 0xc65   : > { %1510 = vst [vmem:[%s2152_s23 + $0x28] sm:$0xff] %v1502_v28  ;;  %v1503_v15 = vadd.f32 %v1495_v23, %v1487_v57  ;;  %v1488_v60 = vmax.f32 %v1479_v33, 0.0 }
 0xc67   : > { %1511 = vst [vmem:[%s2152_s23 + $0x30] sm:$0xff] %v1503_v15  ;;  %v1504_v61 = vadd.f32 %v1496_v59, %v1488_v60 }
 0xc69   : > { %1512 = vst [vmem:[%s2152_s23 + $0x38] sm:$0xff] %v1504_v61 }
 0xc6a   : > { %1954 = shalt.err (!%p1951_p10)
}
 0xc6b   : > { %s1955_s23 = scalar_lea.hbm %s2692_s19, 8192  ;;  %s1959_s30 = scalar_lea.hbm %s2742_s3, 16384 }
 0xc6c   : > { %p1956_p1 = scmp.ne.s32.totalorder %s2692_s19, %s1955_s23  ;;  %p1960_p0 = scmp.lt.s32.totalorder %s2692_s19, %s2742_s3 }
 0xc6d   : > { %p1961_p2 = scmp.lt.s32.totalorder %s1959_s30, %s1955_s23 }
 0xc6e   : > { %p1957_p3 = pnand %p1956_p1, %p2752_p12 }
 0xc6f   : > { %p1962_p6 = por %p1961_p2, %p1960_p0 }
 0xc70   : > { %p1958_p9 = pneg %p1957_p3 }
 0xc72   : > { %p1963_p11 = pnand %p1962_p6, %p1958_p9 }
 0xc74   : > { %1966 = shalt.err (!%p1963_p11)
}
 0xc75   : > { %s2013_s11 = smov 256   ;;  %s2014_s17 = smov 512  }
 0xc76   : > { %s2015_s4 = smov 16  }
 0xc77   : > { %1856 = dma.vmem_to_hbm [thread:$0]  (%p2752_p12), %s2694_s6, 8192, %s2692_s19, %s1514_s16, %s2013_s11, %s2014_s17, %s2015_s4  }
 0xc78 PF: > { %s1542_s7 = sand.u32 1, %s1993_s12   ;;  %p2753_p13 = scmp.ne.s32.totalorder %s2748_s25, 0 }
 0xc79   : > { %p2754_p4 = scmp.ge.s32.totalorder %s2005_s15, 2  ;;  %s1543_s8 = scalar_lea.sflag [#allocation4], %s1542_s7 }
 0xc7b   : > { %p1863_p5 = pnand %p2754_p4, %p2753_p13 }
 0xc7d   : > { %p1864_p7 = pneg %p1863_p5 }
 0xc7f   : > { %1988 = dma.done.wait (%p1864_p7), %s1543_s8, 8192  }
 0xc80   : > { %1990 = vsyncadd (%p1864_p7), %s1543_s8, 4294959104  ;;  %p16_p8 = scmp.ge.s32.totalorder %s2061_s18, 4   ;;  %s2755_s12 = smov %s1997_s13 }
 0xc81   : > { %s2756_s13 = smov %s2001_s14  ;;  %s2757_s14 = smov %s2073_s21 }
 0xc82   : > { %s2758_s15 = smov %s2061_s18  ;;  %18 = sbr.rel (!%p16_p8) target bundleno = 5 (0x5), region = 91 }
 0xc87   :  { %1548 = vsyncpa [#allocation3], 1 }
 0xc88   :  { %1550 = vsyncpa [#allocation3 + $0x1], 1 }
 0xc89   :  { %1551 = vsyncpa [#allocation4], 1 }
 0xc8a   :  { %1553 = vsyncpa [#allocation4 + $0x1], 1 }

</bundles_post_ra>
